<compile_context>
chip_gen: v5e
topology: v5e:2x2
jax: 0.10.0
libtpu: 0.0.40
codegen_flags: <defaults>
</compile_context>

<pallas_src>
import math
import functools

import jax
import jax.numpy as jnp
from jax.experimental import pallas as pl
from jax.experimental.pallas import tpu as pltpu


def _elu(v):
    # nn.ELU with alpha=1.0 (dead exp branch on v>0 is selected away).
    return jnp.where(v > 0, v, jnp.exp(v) - 1.0)


def prpsy_kernel(x_ref, w_ref, b_ref, wl_ref, bl_ref, out_ref):
    # x_ref:  (TB, DP)        padded activations (zero in padded lanes)
    # w_ref:  (3, DP, DP)     3 hidden Linear weights, zero-padded
    # b_ref:  (3, DP)         3 hidden biases, zero-padded
    # wl_ref: (DP, DP)        logit weight, real column at lane 0, rest zeros
    # bl_ref: (1, DP)         logit bias, real value at lane 0
    # out_ref:(TB, DP)        lane-dense logit slab (column 0 is the result)
    h = x_ref[...]
    for l in range(3):  # static unroll: 3 full-width 128x128 MXU matmuls
        h = _elu(
            jnp.dot(h, w_ref[l], preferred_element_type=jnp.float32)
            + b_ref[l][None, :]
        )
    out_ref[...] = (
        jnp.dot(h, wl_ref[...], preferred_element_type=jnp.float32) + bl_ref[...]
    )


def _round_up(n, m):
    return ((n + m - 1) // m) * m


@functools.partial(jax.jit, static_argnames=("batch_tile",))
def prpsy_forward(x, params, *, batch_tile=256):
    """Forward pass of PrpsyNetwork. Returns logits of shape [B, 1]."""
    w, b, wl, bl = params  # (3, D, D), (3, D), (D, 1), (1,)
    B, D = x.shape
    f32 = jnp.float32

    # Pad feature dim to a multiple of 128 lanes (MXU / vreg width).
    DP = _round_up(max(D, 128), 128)

    # Batch tiling: big tiles for throughput, never larger than the
    # (sublane-padded) batch.
    BP0 = _round_up(B, 8)
    TB = min(batch_tile, BP0)
    BP = _round_up(BP0, TB)
    nb = BP // TB

    # Zero-padding is semantics-preserving: padded input lanes are 0, padded
    # weight rows/cols are 0, padded biases are 0, and ELU(0) = 0, so padded
    # lanes stay exactly 0 through every layer.
    xp = jnp.zeros((BP, DP), f32).at[:B, :D].set(x.astype(f32))
    wp = jnp.zeros((3, DP, DP), f32).at[:, :D, :D].set(w.astype(f32))
    bp = jnp.zeros((3, DP), f32).at[:, :D].set(b.astype(f32))
    wlp = jnp.zeros((DP, DP), f32).at[:D, 0:1].set(wl.astype(f32))
    blp = jnp.zeros((1, DP), f32).at[0, 0].set(bl.astype(f32)[0])

    out = pl.pallas_call(
        prpsy_kernel,
        out_shape=jax.ShapeDtypeStruct((BP, DP), f32),
        grid_spec=pltpu.PrefetchScalarGridSpec(
            num_scalar_prefetch=0,
            grid=(nb,),
            in_specs=[
                pl.BlockSpec((TB, DP), lambda i: (i, 0)),       # x tile
                pl.BlockSpec((3, DP, DP), lambda i: (0, 0, 0)),  # hidden W (resident)
                pl.BlockSpec((3, DP), lambda i: (0, 0)),         # hidden b (resident)
                pl.BlockSpec((DP, DP), lambda i: (0, 0)),        # logit W (resident)
                pl.BlockSpec((1, DP), lambda i: (0, 0)),         # logit b (resident)
            ],
            out_specs=pl.BlockSpec((TB, DP), lambda i: (i, 0)),  # lane-dense slab
        ),
        compiler_params=pltpu.CompilerParams(
            dimension_semantics=("parallel",)
        ),
    )(xp, wp, bp, wlp, blp)

    # Real logit is column 0; drop the padded rows/lanes.
    return out[:B, 0:1]


def init_prpsy_params(key, base_dim):
    """Matches init_weights: W ~ N(0, 1/sqrt(fan_in)), bias = 0."""
    k_w, k_wl = jax.random.split(key)
    std = 1.0 / math.sqrt(base_dim)
    w = jax.random.normal(k_w, (3, base_dim, base_dim), jnp.float32) * std
    b = jnp.zeros((3, base_dim), jnp.float32)
    wl = jax.random.normal(k_wl, (base_dim, 1), jnp.float32) * std
    bl = jnp.zeros((1,), jnp.float32)
    return (w, b, wl, bl)


def prpsy_reference(x, params):
    """Pure-JAX reference (same math as the PyTorch module in eval mode)."""
    w, b, wl, bl = params
    h = x
    for l in range(3):
        h = jax.nn.elu(h @ w[l] + b[l])
    return h @ wl + bl


if __name__ == "__main__":
    key = jax.random.PRNGKey(0)
    k_x, k_p = jax.random.split(key)

    B, base_dim = 512, 32
    x = jax.random.normal(k_x, (B, base_dim), jnp.float32)
    params = init_prpsy_params(k_p, base_dim)

    out = prpsy_forward(x, params, batch_tile=256)   # grid = 2 steps
    out = jax.block_until_ready(out)

    ref = prpsy_reference(x, params)

    assert out.shape == (B, 1)
    assert bool(jnp.all(jnp.isfinite(out)))
    assert bool(jnp.allclose(out, ref, atol=2e-3, rtol=2e-3))

    print("KERNEL_OK")
</pallas_src>

<mosaic_0001>
module attributes {stable_mosaic.version = 11 : i64} {
  func.func @prpsy_kernel(%arg0: i32, %arg1: memref<256x128xf32, #tpu.memory_space<vmem>>, %arg2: memref<3x128x128xf32, #tpu.memory_space<vmem>>, %arg3: memref<3x128xf32, #tpu.memory_space<vmem>>, %arg4: memref<128x128xf32, #tpu.memory_space<vmem>>, %arg5: memref<1x128xf32, #tpu.memory_space<vmem>>, %arg6: memref<256x128xf32, #tpu.memory_space<vmem>>) attributes {dimension_semantics = [#tpu.dimension_semantics<parallel>], iteration_bounds = array<i64: 2>, scalar_prefetch = 0 : i64, scratch_operands = 0 : i64, tpu.core_type = #tpu.core_type<tc>, window_params = [{transform_indices = @transform_0, window_bounds = array<i64: 256, 128>}, {pipeline_mode = #tpu.pipeline_mode<synchronous>, transform_indices = @transform_1, window_bounds = array<i64: 3, 128, 128>}, {pipeline_mode = #tpu.pipeline_mode<synchronous>, transform_indices = @transform_2, window_bounds = array<i64: 3, 128>}, {pipeline_mode = #tpu.pipeline_mode<synchronous>, transform_indices = @transform_3, window_bounds = array<i64: 128, 128>}, {pipeline_mode = #tpu.pipeline_mode<synchronous>, transform_indices = @transform_4, window_bounds = array<i64: 1, 128>}, {transform_indices = @transform_5, window_bounds = array<i64: 256, 128>}]} {
    %c0 = arith.constant 0 : index
    %c0_0 = arith.constant 0 : index
    %0 = vector.load %arg1[%c0, %c0_0] : memref<256x128xf32, #tpu.memory_space<vmem>>, vector<256x128xf32>
    %c0_1 = arith.constant 0 : index
    %c0_2 = arith.constant 0 : index
    %c0_3 = arith.constant 0 : index
    %1 = vector.load %arg2[%c0_1, %c0_2, %c0_3] : memref<3x128x128xf32, #tpu.memory_space<vmem>>, vector<1x128x128xf32>
    %2 = vector.shape_cast %1 : vector<1x128x128xf32> to vector<128x128xf32>
    %cst = arith.constant dense<0.000000e+00> : vector<256x128xf32>
    %3 = tpu.matmul %0, %2, %cst {dimension_numbers = #tpu.dot_dimension_numbers<[1], [0], [0], [1], [0, 0, 1, 1], [], []>} : vector<256x128xf32>, vector<128x128xf32>, vector<256x128xf32> -> vector<256x128xf32>
    %c0_4 = arith.constant 0 : index
    %c0_5 = arith.constant 0 : index
    %4 = vector.load %arg3[%c0_4, %c0_5] : memref<3x128xf32, #tpu.memory_space<vmem>>, vector<1x128xf32>
    %5 = vector.shape_cast %4 : vector<1x128xf32> to vector<128xf32>
    %6 = vector.shape_cast %5 : vector<128xf32> to vector<1x128xf32>
    %7 = vector.broadcast %6 : vector<1x128xf32> to vector<256x128xf32>
    %8 = arith.addf %3, %7 : vector<256x128xf32>
    %cst_6 = arith.constant 0.000000e+00 : f32
    %9 = vector.broadcast %cst_6 : f32 to vector<256x128xf32>
    %10 = arith.cmpf ogt, %8, %9 : vector<256x128xf32>
    %11 = math.exp %8 : vector<256x128xf32>
    %cst_7 = arith.constant 1.000000e+00 : f32
    %12 = vector.broadcast %cst_7 : f32 to vector<256x128xf32>
    %13 = arith.subf %11, %12 : vector<256x128xf32>
    %14 = arith.select %10, %8, %13 : vector<256x128xi1>, vector<256x128xf32>
    %c1 = arith.constant 1 : index
    %c0_8 = arith.constant 0 : index
    %c0_9 = arith.constant 0 : index
    %15 = vector.load %arg2[%c1, %c0_8, %c0_9] : memref<3x128x128xf32, #tpu.memory_space<vmem>>, vector<1x128x128xf32>
    %16 = vector.shape_cast %15 : vector<1x128x128xf32> to vector<128x128xf32>
    %cst_10 = arith.constant dense<0.000000e+00> : vector<256x128xf32>
    %17 = tpu.matmul %14, %16, %cst_10 {dimension_numbers = #tpu.dot_dimension_numbers<[1], [0], [0], [1], [0, 0, 1, 1], [], []>} : vector<256x128xf32>, vector<128x128xf32>, vector<256x128xf32> -> vector<256x128xf32>
    %c1_11 = arith.constant 1 : index
    %c0_12 = arith.constant 0 : index
    %18 = vector.load %arg3[%c1_11, %c0_12] : memref<3x128xf32, #tpu.memory_space<vmem>>, vector<1x128xf32>
    %19 = vector.shape_cast %18 : vector<1x128xf32> to vector<128xf32>
    %20 = vector.shape_cast %19 : vector<128xf32> to vector<1x128xf32>
    %21 = vector.broadcast %20 : vector<1x128xf32> to vector<256x128xf32>
    %22 = arith.addf %17, %21 : vector<256x128xf32>
    %cst_13 = arith.constant 0.000000e+00 : f32
    %23 = vector.broadcast %cst_13 : f32 to vector<256x128xf32>
    %24 = arith.cmpf ogt, %22, %23 : vector<256x128xf32>
    %25 = math.exp %22 : vector<256x128xf32>
    %cst_14 = arith.constant 1.000000e+00 : f32
    %26 = vector.broadcast %cst_14 : f32 to vector<256x128xf32>
    %27 = arith.subf %25, %26 : vector<256x128xf32>
    %28 = arith.select %24, %22, %27 : vector<256x128xi1>, vector<256x128xf32>
    %c2 = arith.constant 2 : index
    %c0_15 = arith.constant 0 : index
    %c0_16 = arith.constant 0 : index
    %29 = vector.load %arg2[%c2, %c0_15, %c0_16] : memref<3x128x128xf32, #tpu.memory_space<vmem>>, vector<1x128x128xf32>
    %30 = vector.shape_cast %29 : vector<1x128x128xf32> to vector<128x128xf32>
    %cst_17 = arith.constant dense<0.000000e+00> : vector<256x128xf32>
    %31 = tpu.matmul %28, %30, %cst_17 {dimension_numbers = #tpu.dot_dimension_numbers<[1], [0], [0], [1], [0, 0, 1, 1], [], []>} : vector<256x128xf32>, vector<128x128xf32>, vector<256x128xf32> -> vector<256x128xf32>
    %c2_18 = arith.constant 2 : index
    %c0_19 = arith.constant 0 : index
    %32 = vector.load %arg3[%c2_18, %c0_19] : memref<3x128xf32, #tpu.memory_space<vmem>>, vector<1x128xf32>
    %33 = vector.shape_cast %32 : vector<1x128xf32> to vector<128xf32>
    %34 = vector.shape_cast %33 : vector<128xf32> to vector<1x128xf32>
    %35 = vector.broadcast %34 : vector<1x128xf32> to vector<256x128xf32>
    %36 = arith.addf %31, %35 : vector<256x128xf32>
    %cst_20 = arith.constant 0.000000e+00 : f32
    %37 = vector.broadcast %cst_20 : f32 to vector<256x128xf32>
    %38 = arith.cmpf ogt, %36, %37 : vector<256x128xf32>
    %39 = math.exp %36 : vector<256x128xf32>
    %cst_21 = arith.constant 1.000000e+00 : f32
    %40 = vector.broadcast %cst_21 : f32 to vector<256x128xf32>
    %41 = arith.subf %39, %40 : vector<256x128xf32>
    %42 = arith.select %38, %36, %41 : vector<256x128xi1>, vector<256x128xf32>
    %c0_22 = arith.constant 0 : index
    %c0_23 = arith.constant 0 : index
    %43 = vector.load %arg4[%c0_22, %c0_23] : memref<128x128xf32, #tpu.memory_space<vmem>>, vector<128x128xf32>
    %cst_24 = arith.constant dense<0.000000e+00> : vector<256x128xf32>
    %44 = tpu.matmul %42, %43, %cst_24 {dimension_numbers = #tpu.dot_dimension_numbers<[1], [0], [0], [1], [0, 0, 1, 1], [], []>} : vector<256x128xf32>, vector<128x128xf32>, vector<256x128xf32> -> vector<256x128xf32>
    %c0_25 = arith.constant 0 : index
    %c0_26 = arith.constant 0 : index
    %45 = vector.load %arg5[%c0_25, %c0_26] : memref<1x128xf32, #tpu.memory_space<vmem>>, vector<1x128xf32>
    %46 = vector.broadcast %45 : vector<1x128xf32> to vector<256x128xf32>
    %47 = arith.addf %44, %46 : vector<256x128xf32>
    %c0_27 = arith.constant 0 : index
    %c0_28 = arith.constant 0 : index
    %48 = vector.load %arg6[%c0_27, %c0_28] : memref<256x128xf32, #tpu.memory_space<vmem>>, vector<256x128xf32>
    tpu.vector_store %arg6[%c0_27, %c0_28], %47 {strides = array<i32>} : memref<256x128xf32, #tpu.memory_space<vmem>>, vector<256x128xf32>,
    return
  }
  func.func @transform_0(%arg0: i32) -> (i32, i32) {
    %c0_i32 = arith.constant 0 : i32
    %c0_i32_0 = arith.constant 0 : i32
    return %arg0, %c0_i32 : i32, i32
  }
  func.func @transform_1(%arg0: i32) -> (i32, i32, i32) {
    %c0_i32 = arith.constant 0 : i32
    %c0_i32_0 = arith.constant 0 : i32
    %c0_i32_1 = arith.constant 0 : i32
    %c0_i32_2 = arith.constant 0 : i32
    return %c0_i32, %c0_i32_0, %c0_i32_1 : i32, i32, i32
  }
  func.func @transform_2(%arg0: i32) -> (i32, i32) {
    %c0_i32 = arith.constant 0 : i32
    %c0_i32_0 = arith.constant 0 : i32
    %c0_i32_1 = arith.constant 0 : i32
    return %c0_i32, %c0_i32_0 : i32, i32
  }
  func.func @transform_3(%arg0: i32) -> (i32, i32) {
    %c0_i32 = arith.constant 0 : i32
    %c0_i32_0 = arith.constant 0 : i32
    %c0_i32_1 = arith.constant 0 : i32
    return %c0_i32, %c0_i32_0 : i32, i32
  }
  func.func @transform_4(%arg0: i32) -> (i32, i32) {
    %c0_i32 = arith.constant 0 : i32
    %c0_i32_0 = arith.constant 0 : i32
    %c0_i32_1 = arith.constant 0 : i32
    return %c0_i32, %c0_i32_0 : i32, i32
  }
  func.func @transform_5(%arg0: i32) -> (i32, i32) {
    %c0_i32 = arith.constant 0 : i32
    %c0_i32_0 = arith.constant 0 : i32
    return %arg0, %c0_i32 : i32, i32
  }
}

</mosaic_0001>

<bundles_post_ra>
// kernel: prpsy_forward.1
= control target key start
LH: loop header
LB: loop body
LE: loop exit
PB: predicated region body
PF: predicated region fallthrough
CT: control target
= control target key end

     0   :  { %s1738_s18 = smov 0   ;;  %s2170_s0 = inlined_call_operand.vmem [shape: f32[512,128], index: 0, kind: input, shape index: {}]   ;;  %s2171_s1 = inlined_call_operand.vmem [shape: f32[3,128,128], index: 1, kind: input, shape index: {}]   ;;  %s2172_s2 = inlined_call_operand.vmem [shape: f32[3,128], index: 2, kind: input, shape index: {}]   ;;  %s2173_s3 = inlined_call_operand.vmem [shape: f32[128,128], index: 3, kind: input, shape index: {}]   ;;  %s2174_s4 = inlined_call_operand.vmem [shape: f32[1,128], index: 4, kind: input, shape index: {}]   ;;  %s2175_s5 = inlined_call_operand.vmem [shape: f32[512,128], index: 5, kind: output, shape index: {}]  }
   0x1 LB: > { %s1356_s19 = sadd.s32 4294967295, %s1706_s18   ;;  %p1360_p0 = scmp.ge.s32.totalorder %s1706_s18, 1  ;;  %s1706_s18 = sphi %s1738_s18, %s15_s18  }
   0x2   : > { %p188_p1 = scmp.lt.s32.totalorder %s1706_s18, 3 }
   0x4   : > { %p189_p2 = pnand %p1360_p0, %p188_p1 }
   0x5   : > { %s1361_s11 = sshll.u32 (!%p189_p2), %s1356_s19, 5 }
   0x6   : > { %192 = sbr.rel (%p189_p2) target bundleno = 852 (0x354), region = 40  ;;  %p217_p3 = scmp.lt.s32.totalorder (!%p189_p2), %s1361_s11, 63 }
   0xb   : > { %v275_v0 = vld [vmem:[%s2171_s1 + $0x78] sm:$0xff]  ;;  %v274_v1 = vld [vmem:[%s2171_s1 + $0x70] sm:$0xff]  ;;  %v273_v2 = vld [vmem:[%s2171_s1 + $0x68] sm:$0xff]  ;;  %s2177_s11 = smov (!%p217_p3, %s1361_s11), 63 }
   0xc   : > { %278 = vmatpush.msra.mxu0 %v275_v0  ;;  %v272_v3 = vld [vmem:[%s2171_s1 + $0x60] sm:$0xff]  ;;  %v271_v4 = vld [vmem:[%s2171_s1 + $0x58] sm:$0xff]  ;;  %v270_v5 = vld [vmem:[%s2171_s1 + $0x50] sm:$0xff]  ;;  %s1362_s23 = sshll.u32 %s2177_s11, 3 }
   0xd   : > { %v269_v6 = vld [vmem:[%s2171_s1 + $0x48] sm:$0xff]  ;;  %v268_v7 = vld [vmem:[%s2171_s1 + $0x40] sm:$0xff]  ;;  %v267_v8 = vld [vmem:[%s2171_s1 + $0x38] sm:$0xff]  ;;  %s1799_s30 = scalar_lea.vmem %s2170_s0, %s1362_s23  ;;  %s2088_s9 = scalar_lea.vmem %s2175_s5, %s1362_s23 }
   0xe   : > { %279 = vmatpush.msra.mxu0 %v274_v1  ;;  %v266_v9 = vld [vmem:[%s2171_s1 + $0x30] sm:$0xff]  ;;  %v265_v10 = vld [vmem:[%s2171_s1 + $0x28] sm:$0xff]  ;;  %v264_v11 = vld [vmem:[%s2171_s1 + $0x20] sm:$0xff] }
   0xf   : > { %v263_v12 = vld [vmem:[%s2171_s1 + $0x18] sm:$0xff]  ;;  %v262_v13 = vld [vmem:[%s2171_s1 + $0x10] sm:$0xff]  ;;  %v261_v14 = vld [vmem:[%s2171_s1 + $0x8] sm:$0xff] }
  0x10   : > { %280 = vmatpush.msra.mxu0 %v273_v2  ;;  %v260_v15 = vld [vmem:[%s2171_s1] sm:$0xff]  ;;  %v229_v17 = vld [vmem:[%s1799_s30 + $0x8] sm:$0xff]  ;;  %v230_v18 = vld [vmem:[%s1799_s30 + $0x10] sm:$0xff] }
  0x11   : > { %v228_v16 = vld [vmem:[%s1799_s30] sm:$0xff]  ;;  %v231_v19 = vld [vmem:[%s1799_s30 + $0x18] sm:$0xff]  ;;  %v233_v21 = vld [vmem:[%s1799_s30 + $0x28] sm:$0xff] }
  0x12   : > { %281 = vmatpush.msra.mxu0 %v272_v3  ;;  %v232_v20 = vld [vmem:[%s1799_s30 + $0x20] sm:$0xff]  ;;  %v234_v22 = vld [vmem:[%s1799_s30 + $0x30] sm:$0xff]  ;;  %v235_v23 = vld [vmem:[%s1799_s30 + $0x38] sm:$0xff] }
  0x13   : > { %v236_v24 = vld [vmem:[%s1799_s30 + $0x40] sm:$0xff]  ;;  %v237_v25 = vld [vmem:[%s1799_s30 + $0x48] sm:$0xff]  ;;  %v1412_v26 = vld [vmem:[%s2171_s1 + $0xf8] sm:$0xff] }
  0x14   : > { %282 = vmatpush.msra.mxu0 %v271_v4  ;;  %v1411_v27 = vld [vmem:[%s2171_s1 + $0xf0] sm:$0xff]  ;;  %570 = vmatpush.msra.mxu1 %v1412_v26  ;;  %v1410_v29 = vld [vmem:[%s2171_s1 + $0xe8] sm:$0xff]  ;;  %v1409_v30 = vld [vmem:[%s2171_s1 + $0xe0] sm:$0xff] }
  0x15   : > { %v238_v28 = vld [vmem:[%s1799_s30 + $0x50] sm:$0xff]  ;;  %v1408_v31 = vld [vmem:[%s2171_s1 + $0xd8] sm:$0xff]  ;;  %v1406_v34 = vld [vmem:[%s2171_s1 + $0xc8] sm:$0xff] }
  0x16   : > { %283 = vmatpush.msra.mxu0 %v270_v5  ;;  %571 = vmatpush.msra.mxu1 %v1411_v27  ;;  %v1407_v32 = vld [vmem:[%s2171_s1 + $0xd0] sm:$0xff]  ;;  %v239_v33 = vld [vmem:[%s1799_s30 + $0x58] sm:$0xff]  ;;  %v1405_v35 = vld [vmem:[%s2171_s1 + $0xc0] sm:$0xff] }
  0x17   : > { %v1404_v36 = vld [vmem:[%s2171_s1 + $0xb8] sm:$0xff]  ;;  %v240_v37 = vld [vmem:[%s1799_s30 + $0x60] sm:$0xff]  ;;  %v1403_v38 = vld [vmem:[%s2171_s1 + $0xb0] sm:$0xff] }
  0x18   : > { %284 = vmatpush.msra.mxu0 %v269_v6  ;;  %572 = vmatpush.msra.mxu1 %v1410_v29  ;;  %v1402_v39 = vld [vmem:[%s2171_s1 + $0xa8] sm:$0xff]  ;;  %v1401_v40 = vld [vmem:[%s2171_s1 + $0xa0] sm:$0xff]  ;;  %v1400_v41 = vld [vmem:[%s2171_s1 + $0x98] sm:$0xff] }
  0x19   : > { %v241_v42 = vld [vmem:[%s1799_s30 + $0x68] sm:$0xff]  ;;  %v1399_v43 = vld [vmem:[%s2171_s1 + $0x90] sm:$0xff]  ;;  %v1397_v45 = vld [vmem:[%s2171_s1 + $0x80] sm:$0xff] }
  0x1a   : > { %285 = vmatpush.msra.mxu0 %v268_v7  ;;  %573 = vmatpush.msra.mxu1 %v1409_v30  ;;  %v1398_v44 = vld [vmem:[%s2171_s1 + $0x88] sm:$0xff]  ;;  %v242_v46 = vld [vmem:[%s1799_s30 + $0x70] sm:$0xff]  ;;  %v243_v47 = vld [vmem:[%s1799_s30 + $0x78] sm:$0xff] }
  0x1b   : > { %v1871_v48 = vld [vmem:[%s2172_s2] ss:$0 sm:$0xff]  ;;  %v245_v54 = vld [vmem:[%s1799_s30 + $0x88] sm:$0xff]  ;;  %v246_v61 = vld [vmem:[%s1799_s30 + $0x90] sm:$0xff] }
  0x1c   : > { %286 = vmatpush.msra.mxu0 %v267_v8  ;;  %574 = vmatpush.msra.mxu1 %v1408_v31  ;;  %v244_v50 = vld [vmem:[%s1799_s30 + $0x80] sm:$0xff]  ;;  %v247_v4 = vld [vmem:[%s1799_s30 + $0x98] sm:$0xff] }
  0x1e   : > { %287 = vmatpush.msra.mxu0 %v266_v9  ;;  %575 = vmatpush.msra.mxu1 %v1407_v32  ;;  %v251_v32 = vld [vmem:[%s1799_s30 + $0xb8] sm:$0xff] }
  0x20   : > { %288 = vmatpush.msra.mxu0 %v265_v10  ;;  %576 = vmatpush.msra.mxu1 %v1406_v34 }
  0x22   : > { %289 = vmatpush.msra.mxu0 %v264_v11  ;;  %577 = vmatpush.msra.mxu1 %v1405_v35  ;;  %v248_v11 = vld [vmem:[%s1799_s30 + $0xa0] sm:$0xff] }
  0x24   : > { %290 = vmatpush.msra.mxu0 %v263_v12  ;;  %578 = vmatpush.msra.mxu1 %v1404_v36 }
  0x26   : > { %291 = vmatpush.msra.mxu0 %v262_v13  ;;  %579 = vmatpush.msra.mxu1 %v1403_v38 }
  0x28   : > { %292 = vmatpush.msra.mxu0 %v261_v14  ;;  %580 = vmatpush.msra.mxu1 %v1402_v39  ;;  %v252_v39 = vld [vmem:[%s1799_s30 + $0xc0] sm:$0xff] }
  0x2a   : > { %293 = vmatpush.msra.mxu0 %v260_v15  ;;  %581 = vmatpush.msra.mxu1 %v1401_v40 }
  0x2b   : > { %294 = vmatmul.f32.vlgmr.msra.gmra.mxu0 %v228_v16 }
  0x2c   : > { %582 = vmatpush.msra.mxu1 %v1400_v41 }
  0x2e   : > { %583 = vmatpush.msra.mxu1 %v1399_v43 }
  0x30   : > { %584 = vmatpush.msra.mxu1 %v1398_v44 }
  0x32   : > { %585 = vmatpush.msra.mxu1 %v1397_v45 }
  0x33   : > { %297 = vmatmul.f32.gmra.mxu0 %v229_v17 }
  0x3b   : > { %300 = vmatmul.f32.gmra.mxu0 %v230_v18  ;;  %v249_v18 = vld [vmem:[%s1799_s30 + $0xa8] sm:$0xff] }
  0x43   : > { %303 = vmatmul.f32.gmra.mxu0 %v231_v19 }
  0x4b   : > { %306 = vmatmul.f32.gmra.mxu0 %v232_v20 }
  0x53   : > { %309 = vmatmul.f32.gmra.mxu0 %v233_v21 }
  0x5b   : > { %312 = vmatmul.f32.gmra.mxu0 %v234_v22 }
  0x63   : > { %315 = vmatmul.f32.gmra.mxu0 %v235_v23 }
  0x6b   : > { %318 = vmatmul.f32.gmra.mxu0 %v236_v24 }
  0x73   : > { %321 = vmatmul.f32.gmra.mxu0 %v237_v25  ;;  %v250_v25 = vld [vmem:[%s1799_s30 + $0xb0] sm:$0xff] }
  0x7b   : > { %324 = vmatmul.f32.gmra.mxu0 %v238_v28 }
  0x83   : > { %327 = vmatmul.f32.gmra.mxu0 %v239_v33 }
  0x8b   : > { %330 = vmatmul.f32.gmra.mxu0 %v240_v37 }
  0x93   : > { %333 = vmatmul.f32.gmra.mxu0 %v241_v42 }
  0x9b   : > { %336 = vmatmul.f32.gmra.mxu0 %v242_v46  ;;  %v253_v46 = vld [vmem:[%s1799_s30 + $0xc8] sm:$0xff] }
  0xa3   : > { %339 = vmatmul.f32.gmra.mxu0 %v243_v47 }
  0xa8   : > { %v295_v49 = vpop.f32.mrf.mxu0 }
  0xa9   : > { %v296_v51 = vadd.f32 %v1871_v48, %v295_v49 }
  0xab   : > { %v423_v52 = vmul.f32 1.442695, %v296_v51  ;;  %342 = vmatmul.f32.gmra.mxu0 %v244_v50  ;;  %vm391_vm0 = vcmp.gt.f32.partialorder %v296_v51, 0.0 }
  0xad   : > { %1507 = vpow2.f32 %v423_v52 }
  0xb0   : > { %v298_v53 = vpop.f32.mrf.mxu0 }
  0xb1   : > { %v299_v55 = vadd.f32 %v1871_v48, %v298_v53 }
  0xb3   : > { %v1508_v56 = vpop.eup %1507  ;;  %v425_v57 = vmul.f32 1.442695, %v299_v55  ;;  %345 = vmatmul.f32.gmra.mxu0 %v245_v54  ;;  %vm392_vm1 = vcmp.gt.f32.partialorder %v299_v55, 0.0  ;;  %v254_v54 = vld [vmem:[%s1799_s30 + $0xd0] sm:$0xff] }
  0xb4   : > { %v1365_v58 = vadd.f32 -1.0, %v1508_v56 }
  0xb5   : > { %1509 = vpow2.f32 %v425_v57 }
  0xb6   : > { %v519_v59 = vsel %vm391_vm0, %v296_v51, %v1365_v58 }
  0xb7   : > { %586 = vmatmul.f32.vlgmr.msra.gmra.mxu1 %v519_v59 }
  0xb8   : > { %v301_v60 = vpop.f32.mrf.mxu0 }
  0xb9   : > { %v302_v62 = vadd.f32 %v1871_v48, %v301_v60 }
  0xbb   : > { %v1510_v63 = vpop.eup %1509  ;;  %v427_v0 = vmul.f32 1.442695, %v302_v62  ;;  %348 = vmatmul.f32.gmra.mxu0 %v246_v61  ;;  %vm393_vm2 = vcmp.gt.f32.partialorder %v302_v62, 0.0  ;;  %v255_v61 = vld [vmem:[%s1799_s30 + $0xd8] sm:$0xff] }
  0xbc   : > { %v1366_v1 = vadd.f32 -1.0, %v1510_v63 }
  0xbd   : > { %1511 = vpow2.f32 %v427_v0 }
  0xbe   : > { %v520_v2 = vsel %vm392_vm1, %v299_v55, %v1366_v1  ;;  %v1460_v1 = vld [vmem:[%s2171_s1 + $0x178] sm:$0xff] }
  0xbf   : > { %589 = vmatmul.f32.gmra.mxu1 %v520_v2  ;;  %862 = vmatpush.msra.mxu2 %v1460_v1 }
  0xc0   : > { %v304_v3 = vpop.f32.mrf.mxu0 }
  0xc1   : > { %v305_v5 = vadd.f32 %v1871_v48, %v304_v3  ;;  %v1459_v3 = vld [vmem:[%s2171_s1 + $0x170] sm:$0xff] }
  0xc2   : > { %863 = vmatpush.msra.mxu2 %v1459_v3 }
  0xc3   : > { %v1512_v6 = vpop.eup %1511  ;;  %v429_v7 = vmul.f32 1.442695, %v305_v5  ;;  %351 = vmatmul.f32.gmra.mxu0 %v247_v4  ;;  %vm394_vm3 = vcmp.gt.f32.partialorder %v305_v5, 0.0 }
  0xc4   : > { %v1367_v8 = vadd.f32 -1.0, %v1512_v6 }
  0xc5   : > { %1513 = vpow2.f32 %v429_v7  ;;  %v256_v7 = vld [vmem:[%s1799_s30 + $0xe0] sm:$0xff] }
  0xc6   : > { %v521_v9 = vsel %vm393_vm2, %v302_v62, %v1367_v8 }
  0xc7   : > { %592 = vmatmul.f32.gmra.mxu1 %v521_v9  ;;  %v1457_v9 = vld [vmem:[%s2171_s1 + $0x160] sm:$0xff] }
  0xc8   : > { %v307_v10 = vpop.f32.mrf.mxu0 }
  0xc9   : > { %v308_v12 = vadd.f32 %v1871_v48, %v307_v10 }
  0xcb   : > { %v1514_v13 = vpop.eup %1513  ;;  %v431_v14 = vmul.f32 1.442695, %v308_v12  ;;  %354 = vmatmul.f32.gmra.mxu0 %v248_v11  ;;  %vm395_vm4 = vcmp.gt.f32.partialorder %v308_v12, 0.0 }
  0xcc   : > { %v1368_v15 = vadd.f32 -1.0, %v1514_v13 }
  0xcd   : > { %1515 = vpow2.f32 %v431_v14  ;;  %v1455_v14 = vld [vmem:[%s2171_s1 + $0x150] sm:$0xff] }
  0xce   : > { %v522_v16 = vsel %vm394_vm3, %v305_v5, %v1368_v15  ;;  %v1458_v5 = vld [vmem:[%s2171_s1 + $0x168] sm:$0xff] }
  0xcf   : > { %595 = vmatmul.f32.gmra.mxu1 %v522_v16  ;;  %864 = vmatpush.msra.mxu2 %v1458_v5  ;;  %v1454_v16 = vld [vmem:[%s2171_s1 + $0x148] sm:$0xff] }
  0xd0   : > { %v310_v17 = vpop.f32.mrf.mxu0 }
  0xd1   : > { %v311_v19 = vadd.f32 %v1871_v48, %v310_v17  ;;  %865 = vmatpush.msra.mxu2 %v1457_v9 }
  0xd3   : > { %v1516_v20 = vpop.eup %1515  ;;  %v433_v21 = vmul.f32 1.442695, %v311_v19  ;;  %357 = vmatmul.f32.gmra.mxu0 %v249_v18  ;;  %vm396_vm5 = vcmp.gt.f32.partialorder %v311_v19, 0.0  ;;  %v257_v18 = vld [vmem:[%s1799_s30 + $0xe8] sm:$0xff] }
  0xd4   : > { %v1369_v22 = vadd.f32 -1.0, %v1516_v20  ;;  %v1453_v20 = vld [vmem:[%s2171_s1 + $0x140] sm:$0xff] }
  0xd5   : > { %1517 = vpow2.f32 %v433_v21 }
  0xd6   : > { %v523_v23 = vsel %vm395_vm4, %v308_v12, %v1369_v22  ;;  %v1456_v12 = vld [vmem:[%s2171_s1 + $0x158] sm:$0xff] }
  0xd7   : > { %598 = vmatmul.f32.gmra.mxu1 %v523_v23  ;;  %866 = vmatpush.msra.mxu2 %v1456_v12  ;;  %v1452_v23 = vld [vmem:[%s2171_s1 + $0x138] sm:$0xff] }
  0xd8   : > { %v313_v24 = vpop.f32.mrf.mxu0 }
  0xd9   : > { %v314_v26 = vadd.f32 %v1871_v48, %v313_v24  ;;  %867 = vmatpush.msra.mxu2 %v1455_v14 }
  0xdb   : > { %v1518_v27 = vpop.eup %1517  ;;  %v435_v28 = vmul.f32 1.442695, %v314_v26  ;;  %360 = vmatmul.f32.gmra.mxu0 %v250_v25  ;;  %vm397_vm6 = vcmp.gt.f32.partialorder %v314_v26, 0.0  ;;  %868 = vmatpush.msra.mxu2 %v1454_v16  ;;  %v1451_v25 = vld [vmem:[%s2171_s1 + $0x130] sm:$0xff] }
  0xdc   : > { %v1370_v29 = vadd.f32 -1.0, %v1518_v27  ;;  %v1450_v27 = vld [vmem:[%s2171_s1 + $0x128] sm:$0xff] }
  0xdd   : > { %1519 = vpow2.f32 %v435_v28  ;;  %869 = vmatpush.msra.mxu2 %v1453_v20 }
  0xde   : > { %v524_v30 = vsel %vm396_vm5, %v311_v19, %v1370_v29  ;;  %v258_v29 = vld [vmem:[%s1799_s30 + $0xf0] sm:$0xff] }
  0xdf   : > { %601 = vmatmul.f32.gmra.mxu1 %v524_v30  ;;  %870 = vmatpush.msra.mxu2 %v1452_v23 }
  0xe0   : > { %v316_v31 = vpop.f32.mrf.mxu0 }
  0xe1   : > { %v317_v33 = vadd.f32 %v1871_v48, %v316_v31  ;;  %871 = vmatpush.msra.mxu2 %v1451_v25  ;;  %v1449_v31 = vld [vmem:[%s2171_s1 + $0x120] sm:$0xff] }
  0xe3   : > { %v1520_v34 = vpop.eup %1519  ;;  %v437_v35 = vmul.f32 1.442695, %v317_v33  ;;  %363 = vmatmul.f32.gmra.mxu0 %v251_v32  ;;  %vm398_vm7 = vcmp.gt.f32.partialorder %v317_v33, 0.0  ;;  %872 = vmatpush.msra.mxu2 %v1450_v27 }
  0xe4   : > { %v1371_v36 = vadd.f32 -1.0, %v1520_v34  ;;  %v1448_v34 = vld [vmem:[%s2171_s1 + $0x118] sm:$0xff] }
  0xe5   : > { %1521 = vpow2.f32 %v437_v35  ;;  %873 = vmatpush.msra.mxu2 %v1449_v31 }
  0xe6   : > { %v525_v37 = vsel %vm397_vm6, %v314_v26, %v1371_v36  ;;  %v1447_v36 = vld [vmem:[%s2171_s1 + $0x110] sm:$0xff] }
  0xe7   : > { %604 = vmatmul.f32.gmra.mxu1 %v525_v37  ;;  %874 = vmatpush.msra.mxu2 %v1448_v34 }
  0xe8   : > { %v319_v38 = vpop.f32.mrf.mxu0 }
  0xe9   : > { %v320_v40 = vadd.f32 %v1871_v48, %v319_v38  ;;  %875 = vmatpush.msra.mxu2 %v1447_v36  ;;  %v1446_v38 = vld [vmem:[%s2171_s1 + $0x108] sm:$0xff] }
  0xeb   : > { %v1522_v41 = vpop.eup %1521  ;;  %v439_v42 = vmul.f32 1.442695, %v320_v40  ;;  %366 = vmatmul.f32.gmra.mxu0 %v252_v39  ;;  %vm399_vm8 = vcmp.gt.f32.partialorder %v320_v40, 0.0  ;;  %876 = vmatpush.msra.mxu2 %v1446_v38 }
  0xec   : > { %v1372_v43 = vadd.f32 -1.0, %v1522_v41 }
  0xed   : > { %1523 = vpow2.f32 %v439_v42  ;;  %v1445_v42 = vld [vmem:[%s2171_s1 + $0x100] sm:$0xff] }
  0xee   : > { %v526_v44 = vsel %vm398_vm7, %v317_v33, %v1372_v43  ;;  %877 = vmatpush.msra.mxu2 %v1445_v42 }
  0xef   : > { %607 = vmatmul.f32.gmra.mxu1 %v526_v44 }
  0xf0   : > { %v322_v45 = vpop.f32.mrf.mxu0 }
  0xf1   : > { %v323_v47 = vadd.f32 %v1871_v48, %v322_v45 }
  0xf3   : > { %v1524_v49 = vpop.eup %1523  ;;  %v441_v50 = vmul.f32 1.442695, %v323_v47  ;;  %369 = vmatmul.f32.gmra.mxu0 %v253_v46  ;;  %vm400_vm9 = vcmp.gt.f32.partialorder %v323_v47, 0.0 }
  0xf4   : > { %v1373_v51 = vadd.f32 -1.0, %v1524_v49 }
  0xf5   : > { %1525 = vpow2.f32 %v441_v50 }
  0xf6   : > { %v527_v52 = vsel %vm399_vm8, %v320_v40, %v1373_v51  ;;  %v259_v40 = vld [vmem:[%s1799_s30 + $0xf8] sm:$0xff] }
  0xf7   : > { %610 = vmatmul.f32.gmra.mxu1 %v527_v52 }
  0xf8   : > { %v325_v53 = vpop.f32.mrf.mxu0 }
  0xf9   : > { %v326_v55 = vadd.f32 %v1871_v48, %v325_v53 }
  0xfb   : > { %v1526_v56 = vpop.eup %1525  ;;  %v443_v57 = vmul.f32 1.442695, %v326_v55  ;;  %372 = vmatmul.f32.gmra.mxu0 %v254_v54  ;;  %vm401_vm10 = vcmp.gt.f32.partialorder %v326_v55, 0.0 }
  0xfc   : > { %v1374_v58 = vadd.f32 -1.0, %v1526_v56  ;;  %v1958_v56 = vld [vmem:[%s2172_s2 + $0x1] ss:$0 sm:$0xff] }
  0xfd   : > { %1527 = vpow2.f32 %v443_v57 }
  0xfe   : > { %v528_v59 = vsel %vm400_vm9, %v323_v47, %v1374_v58 }
  0xff   : > { %613 = vmatmul.f32.gmra.mxu1 %v528_v59 }
 0x100   : > { %v328_v60 = vpop.f32.mrf.mxu0 }
 0x101   : > { %v329_v62 = vadd.f32 %v1871_v48, %v328_v60 }
 0x103   : > { %v1528_v63 = vpop.eup %1527  ;;  %v445_v0 = vmul.f32 1.442695, %v329_v62  ;;  %375 = vmatmul.f32.gmra.mxu0 %v255_v61  ;;  %vm402_vm11 = vcmp.gt.f32.partialorder %v329_v62, 0.0 }
 0x104   : > { %v1375_v2 = vadd.f32 -1.0, %v1528_v63 }
 0x105   : > { %1529 = vpow2.f32 %v445_v0 }
 0x106   : > { %v529_v4 = vsel %vm401_vm10, %v326_v55, %v1375_v2 }
 0x107   : > { %616 = vmatmul.f32.gmra.mxu1 %v529_v4 }
 0x108   : > { %v331_v6 = vpop.f32.mrf.mxu0 }
 0x109   : > { %v332_v8 = vadd.f32 %v1871_v48, %v331_v6 }
 0x10b   : > { %v1530_v10 = vpop.eup %1529  ;;  %v447_v11 = vmul.f32 1.442695, %v332_v8  ;;  %378 = vmatmul.f32.gmra.mxu0 %v256_v7  ;;  %vm403_vm12 = vcmp.gt.f32.partialorder %v332_v8, 0.0 }
 0x10c   : > { %v1376_v13 = vadd.f32 -1.0, %v1530_v10 }
 0x10d   : > { %1531 = vpow2.f32 %v447_v11 }
 0x10e   : > { %v530_v15 = vsel %vm402_vm11, %v329_v62, %v1376_v13 }
 0x10f   : > { %619 = vmatmul.f32.gmra.mxu1 %v530_v15 }
 0x110   : > { %v334_v17 = vpop.f32.mrf.mxu0 }
 0x111   : > { %v335_v19 = vadd.f32 %v1871_v48, %v334_v17 }
 0x113   : > { %v1532_v21 = vpop.eup %1531  ;;  %v449_v22 = vmul.f32 1.442695, %v335_v19  ;;  %381 = vmatmul.f32.gmra.mxu0 %v257_v18  ;;  %vm404_vm13 = vcmp.gt.f32.partialorder %v335_v19, 0.0 }
 0x114   : > { %v1377_v24 = vadd.f32 -1.0, %v1532_v21 }
 0x115   : > { %1533 = vpow2.f32 %v449_v22 }
 0x116   : > { %v531_v26 = vsel %vm403_vm12, %v332_v8, %v1377_v24 }
 0x117   : > { %622 = vmatmul.f32.gmra.mxu1 %v531_v26 }
 0x118   : > { %v337_v28 = vpop.f32.mrf.mxu0 }
 0x119   : > { %v338_v30 = vadd.f32 %v1871_v48, %v337_v28 }
 0x11b   : > { %v1534_v32 = vpop.eup %1533  ;;  %v451_v33 = vmul.f32 1.442695, %v338_v30  ;;  %384 = vmatmul.f32.gmra.mxu0 %v258_v29  ;;  %vm405_vm14 = vcmp.gt.f32.partialorder %v338_v30, 0.0 }
 0x11c   : > { %v1378_v35 = vadd.f32 -1.0, %v1534_v32 }
 0x11d   : > { %1535 = vpow2.f32 %v451_v33 }
 0x11e   : > { %v532_v37 = vsel %vm404_vm13, %v335_v19, %v1378_v35 }
 0x11f   : > { %625 = vmatmul.f32.gmra.mxu1 %v532_v37 }
 0x120   : > { %v340_v39 = vpop.f32.mrf.mxu0 }
 0x121   : > { %v341_v41 = vadd.f32 %v1871_v48, %v340_v39 }
 0x123   : > { %v1536_v43 = vpop.eup %1535  ;;  %v453_v44 = vmul.f32 1.442695, %v341_v41  ;;  %387 = vmatmul.f32.gmra.mxu0 %v259_v40  ;;  %vm406_vm15 = vcmp.gt.f32.partialorder %v341_v41, 0.0 }
 0x124   : > { %v1379_v45 = vadd.f32 -1.0, %v1536_v43 }
 0x125   : > { %1537 = vpow2.f32 %v453_v44 }
 0x126   : > { %v533_v46 = vsel %vm405_vm14, %v338_v30, %v1379_v45 }
 0x127   : > { %628 = vmatmul.f32.gmra.mxu1 %v533_v46 }
 0x128   : > { %v343_v47 = vpop.f32.mrf.mxu0 }
 0x129   : > { %v344_v49 = vadd.f32 %v1871_v48, %v343_v47 }
 0x12b   : > { %v1538_v50 = vpop.eup %1537  ;;  %v455_v51 = vmul.f32 1.442695, %v344_v49  ;;  %vm407_vm0 = vcmp.gt.f32.partialorder %v344_v49, 0.0 }
 0x12c   : > { %v1380_v52 = vadd.f32 -1.0, %v1538_v50 }
 0x12d   : > { %1539 = vpow2.f32 %v455_v51 }
 0x12e   : > { %v534_v53 = vsel %vm406_vm15, %v341_v41, %v1380_v52 }
 0x12f   : > { %631 = vmatmul.f32.gmra.mxu1 %v534_v53 }
 0x130   : > { %v346_v54 = vpop.f32.mrf.mxu0 }
 0x131   : > { %v347_v55 = vadd.f32 %v1871_v48, %v346_v54 }
 0x133   : > { %v1540_v57 = vpop.eup %1539  ;;  %v457_v58 = vmul.f32 1.442695, %v347_v55  ;;  %vm408_vm1 = vcmp.gt.f32.partialorder %v347_v55, 0.0 }
 0x134   : > { %v587_v59 = vpop.f32.mrf.mxu1  ;;  %v1381_v60 = vadd.f32 -1.0, %v1540_v57 }
 0x135   : > { %1541 = vpow2.f32 %v457_v58  ;;  %v588_v61 = vadd.f32 %v1958_v56, %v587_v59 }
 0x136   : > { %v535_v62 = vsel %vm407_vm0, %v344_v49, %v1381_v60 }
 0x137   : > { %v715_v63 = vmul.f32 1.442695, %v588_v61  ;;  %634 = vmatmul.f32.gmra.mxu1 %v535_v62  ;;  %vm683_vm2 = vcmp.gt.f32.partialorder %v588_v61, 0.0 }
 0x138   : > { %v349_v0 = vpop.f32.mrf.mxu0 }
 0x139   : > { %v350_v1 = vadd.f32 %v1871_v48, %v349_v0  ;;  %1543 = vpow2.f32 %v715_v63 }
 0x13b   : > { %v1542_v2 = vpop.eup %1541  ;;  %v459_v3 = vmul.f32 1.442695, %v350_v1  ;;  %vm409_vm3 = vcmp.gt.f32.partialorder %v350_v1, 0.0 }
 0x13c   : > { %v590_v4 = vpop.f32.mrf.mxu1  ;;  %v1382_v5 = vadd.f32 -1.0, %v1542_v2 }
 0x13d   : > { %1545 = vpow2.f32 %v459_v3  ;;  %v591_v6 = vadd.f32 %v1958_v56, %v590_v4 }
 0x13e   : > { %v536_v7 = vsel %vm408_vm1, %v347_v55, %v1382_v5 }
 0x13f   : > { %v1544_v8 = vpop.eup %1543  ;;  %v717_v9 = vmul.f32 1.442695, %v591_v6  ;;  %637 = vmatmul.f32.gmra.mxu1 %v536_v7  ;;  %vm684_vm4 = vcmp.gt.f32.partialorder %v591_v6, 0.0 }
 0x140   : > { %v352_v10 = vpop.f32.mrf.mxu0  ;;  %v1413_v11 = vadd.f32 -1.0, %v1544_v8 }
 0x141   : > { %v353_v12 = vadd.f32 %v1871_v48, %v352_v10  ;;  %1547 = vpow2.f32 %v717_v9 }
 0x142   : > { %v811_v13 = vsel %vm683_vm2, %v588_v61, %v1413_v11 }
 0x143   : > { %v1546_v14 = vpop.eup %1545  ;;  %v461_v15 = vmul.f32 1.442695, %v353_v12  ;;  %878 = vmatmul.f32.vlgmr.msra.gmra.mxu2 %v811_v13  ;;  %vm410_vm5 = vcmp.gt.f32.partialorder %v353_v12, 0.0 }
 0x144   : > { %v593_v16 = vpop.f32.mrf.mxu1  ;;  %v1383_v17 = vadd.f32 -1.0, %v1546_v14 }
 0x145   : > { %1549 = vpow2.f32 %v461_v15  ;;  %v594_v18 = vadd.f32 %v1958_v56, %v593_v16 }
 0x146   : > { %v537_v19 = vsel %vm409_vm3, %v350_v1, %v1383_v17 }
 0x147   : > { %v1548_v20 = vpop.eup %1547  ;;  %v719_v21 = vmul.f32 1.442695, %v594_v18  ;;  %640 = vmatmul.f32.gmra.mxu1 %v537_v19  ;;  %vm685_vm6 = vcmp.gt.f32.partialorder %v594_v18, 0.0 }
 0x148   : > { %v355_v22 = vpop.f32.mrf.mxu0  ;;  %v1414_v23 = vadd.f32 -1.0, %v1548_v20 }
 0x149   : > { %v356_v24 = vadd.f32 %v1871_v48, %v355_v22  ;;  %1551 = vpow2.f32 %v719_v21 }
 0x14a   : > { %v812_v25 = vsel %vm684_vm4, %v591_v6, %v1414_v23 }
 0x14b   : > { %v1550_v26 = vpop.eup %1549  ;;  %v463_v27 = vmul.f32 1.442695, %v356_v24  ;;  %881 = vmatmul.f32.gmra.mxu2 %v812_v25  ;;  %vm411_vm7 = vcmp.gt.f32.partialorder %v356_v24, 0.0 }
 0x14c   : > { %v596_v28 = vpop.f32.mrf.mxu1  ;;  %v1384_v29 = vadd.f32 -1.0, %v1550_v26 }
 0x14d   : > { %1553 = vpow2.f32 %v463_v27  ;;  %v597_v30 = vadd.f32 %v1958_v56, %v596_v28 }
 0x14e   : > { %v538_v31 = vsel %vm410_vm5, %v353_v12, %v1384_v29 }
 0x14f   : > { %v1552_v32 = vpop.eup %1551  ;;  %v721_v33 = vmul.f32 1.442695, %v597_v30  ;;  %643 = vmatmul.f32.gmra.mxu1 %v538_v31  ;;  %vm686_vm8 = vcmp.gt.f32.partialorder %v597_v30, 0.0 }
 0x150   : > { %v358_v34 = vpop.f32.mrf.mxu0  ;;  %v1415_v35 = vadd.f32 -1.0, %v1552_v32 }
 0x151   : > { %v359_v36 = vadd.f32 %v1871_v48, %v358_v34  ;;  %1555 = vpow2.f32 %v721_v33 }
 0x152   : > { %v813_v37 = vsel %vm685_vm6, %v594_v18, %v1415_v35 }
 0x153   : > { %v1554_v38 = vpop.eup %1553  ;;  %v465_v39 = vmul.f32 1.442695, %v359_v36  ;;  %884 = vmatmul.f32.gmra.mxu2 %v813_v37  ;;  %vm412_vm9 = vcmp.gt.f32.partialorder %v359_v36, 0.0 }
 0x154   : > { %v599_v40 = vpop.f32.mrf.mxu1  ;;  %v1385_v41 = vadd.f32 -1.0, %v1554_v38 }
 0x155   : > { %1557 = vpow2.f32 %v465_v39  ;;  %v600_v42 = vadd.f32 %v1958_v56, %v599_v40 }
 0x156   : > { %v539_v43 = vsel %vm411_vm7, %v356_v24, %v1385_v41 }
 0x157   : > { %v1556_v44 = vpop.eup %1555  ;;  %v723_v45 = vmul.f32 1.442695, %v600_v42  ;;  %646 = vmatmul.f32.gmra.mxu1 %v539_v43  ;;  %vm687_vm10 = vcmp.gt.f32.partialorder %v600_v42, 0.0 }
 0x158   : > { %v361_v46 = vpop.f32.mrf.mxu0  ;;  %v1416_v47 = vadd.f32 -1.0, %v1556_v44 }
 0x159   : > { %v362_v49 = vadd.f32 %v1871_v48, %v361_v46  ;;  %1559 = vpow2.f32 %v723_v45 }
 0x15a   : > { %v814_v50 = vsel %vm686_vm8, %v597_v30, %v1416_v47 }
 0x15b   : > { %v1558_v51 = vpop.eup %1557  ;;  %v467_v52 = vmul.f32 1.442695, %v362_v49  ;;  %887 = vmatmul.f32.gmra.mxu2 %v814_v50  ;;  %vm413_vm11 = vcmp.gt.f32.partialorder %v362_v49, 0.0 }
 0x15c   : > { %v602_v53 = vpop.f32.mrf.mxu1  ;;  %v1386_v54 = vadd.f32 -1.0, %v1558_v51 }
 0x15d   : > { %1561 = vpow2.f32 %v467_v52  ;;  %v603_v55 = vadd.f32 %v1958_v56, %v602_v53 }
 0x15e   : > { %v540_v57 = vsel %vm412_vm9, %v359_v36, %v1386_v54 }
 0x15f   : > { %v1560_v58 = vpop.eup %1559  ;;  %v725_v59 = vmul.f32 1.442695, %v603_v55  ;;  %649 = vmatmul.f32.gmra.mxu1 %v540_v57  ;;  %vm688_vm12 = vcmp.gt.f32.partialorder %v603_v55, 0.0 }
 0x160   : > { %v364_v60 = vpop.f32.mrf.mxu0  ;;  %v1417_v61 = vadd.f32 -1.0, %v1560_v58 }
 0x161   : > { %v365_v62 = vadd.f32 %v1871_v48, %v364_v60  ;;  %1563 = vpow2.f32 %v725_v59 }
 0x162   : > { %v815_v63 = vsel %vm687_vm10, %v600_v42, %v1417_v61 }
 0x163   : > { %v1562_v0 = vpop.eup %1561  ;;  %v469_v1 = vmul.f32 1.442695, %v365_v62  ;;  %890 = vmatmul.f32.gmra.mxu2 %v815_v63  ;;  %vm414_vm13 = vcmp.gt.f32.partialorder %v365_v62, 0.0 }
 0x164   : > { %v605_v2 = vpop.f32.mrf.mxu1  ;;  %v1387_v3 = vadd.f32 -1.0, %v1562_v0 }
 0x165   : > { %1565 = vpow2.f32 %v469_v1  ;;  %v606_v4 = vadd.f32 %v1958_v56, %v605_v2 }
 0x166   : > { %v541_v5 = vsel %vm413_vm11, %v362_v49, %v1387_v3 }
 0x167   : > { %v1564_v6 = vpop.eup %1563  ;;  %v727_v7 = vmul.f32 1.442695, %v606_v4  ;;  %652 = vmatmul.f32.gmra.mxu1 %v541_v5  ;;  %vm689_vm14 = vcmp.gt.f32.partialorder %v606_v4, 0.0 }
 0x168   : > { %v367_v8 = vpop.f32.mrf.mxu0  ;;  %v1418_v9 = vadd.f32 -1.0, %v1564_v6 }
 0x169   : > { %v368_v10 = vadd.f32 %v1871_v48, %v367_v8  ;;  %1567 = vpow2.f32 %v727_v7 }
 0x16a   : > { %v816_v11 = vsel %vm688_vm12, %v603_v55, %v1418_v9 }
 0x16b   : > { %v1566_v12 = vpop.eup %1565  ;;  %v471_v13 = vmul.f32 1.442695, %v368_v10  ;;  %893 = vmatmul.f32.gmra.mxu2 %v816_v11  ;;  %vm415_vm15 = vcmp.gt.f32.partialorder %v368_v10, 0.0 }
 0x16c   : > { %v608_v14 = vpop.f32.mrf.mxu1  ;;  %v1388_v15 = vadd.f32 -1.0, %v1566_v12 }
 0x16d   : > { %1569 = vpow2.f32 %v471_v13  ;;  %v609_v16 = vadd.f32 %v1958_v56, %v608_v14 }
 0x16e   : > { %v542_v17 = vsel %vm414_vm13, %v365_v62, %v1388_v15  ;;  %v1150_v15 = vld [vmem:[%s2173_s3 + $0x78] sm:$0xff] }
 0x16f   : > { %v1568_v18 = vpop.eup %1567  ;;  %v729_v19 = vmul.f32 1.442695, %v609_v16  ;;  %655 = vmatmul.f32.gmra.mxu1 %v542_v17  ;;  %vm690_vm0 = vcmp.gt.f32.partialorder %v609_v16, 0.0  ;;  %1155 = vmatpush.msra.mxu3 %v1150_v15 }
 0x170   : > { %v370_v20 = vpop.f32.mrf.mxu0  ;;  %v1419_v21 = vadd.f32 -1.0, %v1568_v18 }
 0x171   : > { %v371_v22 = vadd.f32 %v1871_v48, %v370_v20  ;;  %1571 = vpow2.f32 %v729_v19  ;;  %v1149_v19 = vld [vmem:[%s2173_s3 + $0x70] sm:$0xff] }
 0x172   : > { %v817_v23 = vsel %vm689_vm14, %v606_v4, %v1419_v21  ;;  %1156 = vmatpush.msra.mxu3 %v1149_v19 }
 0x173   : > { %v1570_v24 = vpop.eup %1569  ;;  %v473_v25 = vmul.f32 1.442695, %v371_v22  ;;  %896 = vmatmul.f32.gmra.mxu2 %v817_v23  ;;  %vm416_vm1 = vcmp.gt.f32.partialorder %v371_v22, 0.0  ;;  %v1148_v23 = vld [vmem:[%s2173_s3 + $0x68] sm:$0xff] }
 0x174   : > { %v611_v26 = vpop.f32.mrf.mxu1  ;;  %v1389_v27 = vadd.f32 -1.0, %v1570_v24  ;;  %1157 = vmatpush.msra.mxu3 %v1148_v23 }
 0x175   : > { %1573 = vpow2.f32 %v473_v25  ;;  %v612_v28 = vadd.f32 %v1958_v56, %v611_v26 }
 0x176   : > { %v543_v29 = vsel %vm415_vm15, %v368_v10, %v1389_v27  ;;  %v1147_v27 = vld [vmem:[%s2173_s3 + $0x60] sm:$0xff] }
 0x177   : > { %v1572_v30 = vpop.eup %1571  ;;  %v731_v31 = vmul.f32 1.442695, %v612_v28  ;;  %658 = vmatmul.f32.gmra.mxu1 %v543_v29  ;;  %vm691_vm2 = vcmp.gt.f32.partialorder %v612_v28, 0.0  ;;  %1158 = vmatpush.msra.mxu3 %v1147_v27 }
 0x178   : > { %v373_v32 = vpop.f32.mrf.mxu0  ;;  %v1420_v33 = vadd.f32 -1.0, %v1572_v30 }
 0x179   : > { %1575 = vpow2.f32 %v731_v31  ;;  %v374_v34 = vadd.f32 %v1871_v48, %v373_v32  ;;  %v1146_v31 = vld [vmem:[%s2173_s3 + $0x58] sm:$0xff] }
 0x17a   : > { %v818_v35 = vsel %vm690_vm0, %v609_v16, %v1420_v33  ;;  %1159 = vmatpush.msra.mxu3 %v1146_v31 }
 0x17b   : > { %v1574_v36 = vpop.eup %1573  ;;  %v475_v37 = vmul.f32 1.442695, %v374_v34  ;;  %899 = vmatmul.f32.gmra.mxu2 %v818_v35  ;;  %vm417_vm3 = vcmp.gt.f32.partialorder %v374_v34, 0.0  ;;  %v1145_v35 = vld [vmem:[%s2173_s3 + $0x50] sm:$0xff] }
 0x17c   : > { %v614_v38 = vpop.f32.mrf.mxu1  ;;  %v1390_v39 = vadd.f32 -1.0, %v1574_v36  ;;  %1160 = vmatpush.msra.mxu3 %v1145_v35 }
 0x17d   : > { %1577 = vpow2.f32 %v475_v37  ;;  %v615_v40 = vadd.f32 %v1958_v56, %v614_v38 }
 0x17e   : > { %v544_v41 = vsel %vm416_vm1, %v371_v22, %v1390_v39  ;;  %v1144_v39 = vld [vmem:[%s2173_s3 + $0x48] sm:$0xff] }
 0x17f   : > { %v1576_v42 = vpop.eup %1575  ;;  %v733_v43 = vmul.f32 1.442695, %v615_v40  ;;  %661 = vmatmul.f32.gmra.mxu1 %v544_v41  ;;  %vm692_vm4 = vcmp.gt.f32.partialorder %v615_v40, 0.0  ;;  %1161 = vmatpush.msra.mxu3 %v1144_v39 }
 0x180   : > { %v376_v44 = vpop.f32.mrf.mxu0  ;;  %v1421_v45 = vadd.f32 -1.0, %v1576_v42 }
 0x181   : > { %1579 = vpow2.f32 %v733_v43  ;;  %v377_v46 = vadd.f32 %v1871_v48, %v376_v44  ;;  %v1143_v43 = vld [vmem:[%s2173_s3 + $0x40] sm:$0xff] }
 0x182   : > { %v819_v47 = vsel %vm691_vm2, %v612_v28, %v1421_v45  ;;  %1162 = vmatpush.msra.mxu3 %v1143_v43 }
 0x183   : > { %v1578_v49 = vpop.eup %1577  ;;  %v477_v50 = vmul.f32 1.442695, %v377_v46  ;;  %902 = vmatmul.f32.gmra.mxu2 %v819_v47  ;;  %vm418_vm5 = vcmp.gt.f32.partialorder %v377_v46, 0.0 }
 0x184   : > { %v617_v51 = vpop.f32.mrf.mxu1  ;;  %v1391_v52 = vadd.f32 -1.0, %v1578_v49 }
 0x185   : > { %1581 = vpow2.f32 %v477_v50  ;;  %v618_v53 = vadd.f32 %v1958_v56, %v617_v51  ;;  %v1141_v51 = vld [vmem:[%s2173_s3 + $0x30] sm:$0xff] }
 0x186   : > { %v545_v54 = vsel %vm417_vm3, %v374_v34, %v1391_v52 }
 0x187   : > { %v1580_v55 = vpop.eup %1579  ;;  %v735_v57 = vmul.f32 1.442695, %v618_v53  ;;  %664 = vmatmul.f32.gmra.mxu1 %v545_v54  ;;  %vm693_vm6 = vcmp.gt.f32.partialorder %v618_v53, 0.0 }
 0x188   : > { %v379_v58 = vpop.f32.mrf.mxu0  ;;  %v1422_v59 = vadd.f32 -1.0, %v1580_v55 }
 0x189   : > { %1583 = vpow2.f32 %v735_v57  ;;  %v380_v60 = vadd.f32 %v1871_v48, %v379_v58  ;;  %v1139_v57 = vld [vmem:[%s2173_s3 + $0x20] sm:$0xff] }
 0x18a   : > { %v820_v61 = vsel %vm692_vm4, %v615_v40, %v1422_v59 }
 0x18b   : > { %v1582_v62 = vpop.eup %1581  ;;  %v479_v63 = vmul.f32 1.442695, %v380_v60  ;;  %905 = vmatmul.f32.gmra.mxu2 %v820_v61  ;;  %vm419_vm7 = vcmp.gt.f32.partialorder %v380_v60, 0.0  ;;  %v1138_v61 = vld [vmem:[%s2173_s3 + $0x18] sm:$0xff] }
 0x18c   : > { %v620_v0 = vpop.f32.mrf.mxu1  ;;  %v1392_v1 = vadd.f32 -1.0, %v1582_v62 }
 0x18d   : > { %1585 = vpow2.f32 %v479_v63  ;;  %v621_v2 = vadd.f32 %v1958_v56, %v620_v0 }
 0x18e   : > { %v546_v3 = vsel %vm418_vm5, %v377_v46, %v1392_v1  ;;  %v1142_v46 = vld [vmem:[%s2173_s3 + $0x38] sm:$0xff]  ;;  %v1137_v1 = vld [vmem:[%s2173_s3 + $0x10] sm:$0xff] }
 0x18f   : > { %v1584_v4 = vpop.eup %1583  ;;  %v737_v5 = vmul.f32 1.442695, %v621_v2  ;;  %667 = vmatmul.f32.gmra.mxu1 %v546_v3  ;;  %vm694_vm8 = vcmp.gt.f32.partialorder %v621_v2, 0.0  ;;  %1163 = vmatpush.msra.mxu3 %v1142_v46  ;;  %v1136_v3 = vld [vmem:[%s2173_s3 + $0x8] sm:$0xff] }
 0x190   : > { %v382_v6 = vpop.f32.mrf.mxu0  ;;  %v1423_v7 = vadd.f32 -1.0, %v1584_v4 }
 0x191   : > { %1587 = vpow2.f32 %v737_v5  ;;  %v383_v8 = vadd.f32 %v1871_v48, %v382_v6  ;;  %1164 = vmatpush.msra.mxu3 %v1141_v51  ;;  %v1135_v5 = vld [vmem:[%s2173_s3] sm:$0xff] }
 0x192   : > { %v821_v9 = vsel %vm693_vm6, %v618_v53, %v1423_v7  ;;  %v1140_v53 = vld [vmem:[%s2173_s3 + $0x28] sm:$0xff] }
 0x193   : > { %v1586_v10 = vpop.eup %1585  ;;  %v481_v11 = vmul.f32 1.442695, %v383_v8  ;;  %908 = vmatmul.f32.gmra.mxu2 %v821_v9  ;;  %vm420_vm9 = vcmp.gt.f32.partialorder %v383_v8, 0.0  ;;  %1165 = vmatpush.msra.mxu3 %v1140_v53 }
 0x194   : > { %v623_v12 = vpop.f32.mrf.mxu1  ;;  %v1393_v13 = vadd.f32 -1.0, %v1586_v10 }
 0x195   : > { %1589 = vpow2.f32 %v481_v11  ;;  %v624_v14 = vadd.f32 %v1958_v56, %v623_v12  ;;  %1166 = vmatpush.msra.mxu3 %v1139_v57 }
 0x196   : > { %v547_v16 = vsel %vm419_vm7, %v380_v60, %v1393_v13 }
 0x197   : > { %v1588_v17 = vpop.eup %1587  ;;  %v739_v18 = vmul.f32 1.442695, %v624_v14  ;;  %670 = vmatmul.f32.gmra.mxu1 %v547_v16  ;;  %vm695_vm10 = vcmp.gt.f32.partialorder %v624_v14, 0.0  ;;  %1167 = vmatpush.msra.mxu3 %v1138_v61 }
 0x198   : > { %v385_v20 = vpop.f32.mrf.mxu0  ;;  %v1424_v21 = vadd.f32 -1.0, %v1588_v17 }
 0x199   : > { %1591 = vpow2.f32 %v739_v18  ;;  %v386_v22 = vadd.f32 %v1871_v48, %v385_v20  ;;  %1168 = vmatpush.msra.mxu3 %v1137_v1  ;;  %v2043_v18 = vld [vmem:[%s2172_s2 + $0x2] ss:$0 sm:$0xff] }
 0x19a   : > { %v822_v24 = vsel %vm694_vm8, %v621_v2, %v1424_v21 }
 0x19b   : > { %v1590_v25 = vpop.eup %1589  ;;  %v483_v26 = vmul.f32 1.442695, %v386_v22  ;;  %911 = vmatmul.f32.gmra.mxu2 %v822_v24  ;;  %vm421_vm11 = vcmp.gt.f32.partialorder %v386_v22, 0.0  ;;  %1169 = vmatpush.msra.mxu3 %v1136_v3 }
 0x19c   : > { %v626_v28 = vpop.f32.mrf.mxu1  ;;  %v1394_v29 = vadd.f32 -1.0, %v1590_v25 }
 0x19d   : > { %1593 = vpow2.f32 %v483_v26  ;;  %v627_v30 = vadd.f32 %v1958_v56, %v626_v28  ;;  %1170 = vmatpush.msra.mxu3 %v1135_v5 }
 0x19e   : > { %v548_v32 = vsel %vm420_vm9, %v383_v8, %v1394_v29 }
 0x19f   : > { %v1592_v33 = vpop.eup %1591  ;;  %v741_v34 = vmul.f32 1.442695, %v627_v30  ;;  %673 = vmatmul.f32.gmra.mxu1 %v548_v32  ;;  %vm696_vm12 = vcmp.gt.f32.partialorder %v627_v30, 0.0 }
 0x1a0   : > { %v388_v36 = vpop.f32.mrf.mxu0  ;;  %v1425_v37 = vadd.f32 -1.0, %v1592_v33 }
 0x1a1   : > { %1595 = vpow2.f32 %v741_v34  ;;  %v389_v38 = vadd.f32 %v1871_v48, %v388_v36 }
 0x1a2   : > { %v823_v40 = vsel %vm695_vm10, %v624_v14, %v1425_v37 }
 0x1a3   : > { %v1594_v41 = vpop.eup %1593  ;;  %v485_v42 = vmul.f32 1.442695, %v389_v38  ;;  %914 = vmatmul.f32.gmra.mxu2 %v823_v40  ;;  %vm422_vm13 = vcmp.gt.f32.partialorder %v389_v38, 0.0 }
 0x1a4   : > { %v629_v44 = vpop.f32.mrf.mxu1  ;;  %v1395_v45 = vadd.f32 -1.0, %v1594_v41 }
 0x1a5   : > { %1597 = vpow2.f32 %v485_v42  ;;  %v630_v48 = vadd.f32 %v1958_v56, %v629_v44 }
 0x1a6   : > { %v549_v47 = vsel %vm421_vm11, %v386_v22, %v1395_v45 }
 0x1a7   : > { %v1596_v49 = vpop.eup %1595  ;;  %v743_v50 = vmul.f32 1.442695, %v630_v48  ;;  %676 = vmatmul.f32.gmra.mxu1 %v549_v47  ;;  %vm697_vm14 = vcmp.gt.f32.partialorder %v630_v48, 0.0 }
 0x1a8   : > { %v1426_v52 = vadd.f32 -1.0, %v1596_v49 }
 0x1a9   : > { %1599 = vpow2.f32 %v743_v50 }
 0x1aa   : > { %v824_v54 = vsel %vm696_vm12, %v627_v30, %v1426_v52 }
 0x1ab   : > { %v1598_v55 = vpop.eup %1597  ;;  %917 = vmatmul.f32.gmra.mxu2 %v824_v54 }
 0x1ac   : > { %v632_v58 = vpop.f32.mrf.mxu1  ;;  %v1396_v59 = vadd.f32 -1.0, %v1598_v55 }
 0x1ad   : > { %v633_v60 = vadd.f32 %v1958_v56, %v632_v58 }
 0x1ae   : > { %v550_v62 = vsel %vm422_vm13, %v389_v38, %v1396_v59 }
 0x1af   : > { %v1600_v63 = vpop.eup %1599  ;;  %v745_v0 = vmul.f32 1.442695, %v633_v60  ;;  %679 = vmatmul.f32.gmra.mxu1 %v550_v62  ;;  %vm698_vm15 = vcmp.gt.f32.partialorder %v633_v60, 0.0 }
 0x1b0   : > { %v1427_v2 = vadd.f32 -1.0, %v1600_v63 }
 0x1b1   : > { %1601 = vpow2.f32 %v745_v0 }
 0x1b2   : > { %v825_v4 = vsel %vm697_vm14, %v630_v48, %v1427_v2 }
 0x1b3   : > { %920 = vmatmul.f32.gmra.mxu2 %v825_v4 }
 0x1b4   : > { %v635_v6 = vpop.f32.mrf.mxu1 }
 0x1b5   : > { %v636_v7 = vadd.f32 %v1958_v56, %v635_v6 }
 0x1b7   : > { %v1602_v8 = vpop.eup %1601  ;;  %v747_v9 = vmul.f32 1.442695, %v636_v7  ;;  %vm699_vm0 = vcmp.gt.f32.partialorder %v636_v7, 0.0 }
 0x1b8   : > { %v1428_v10 = vadd.f32 -1.0, %v1602_v8 }
 0x1b9   : > { %1603 = vpow2.f32 %v747_v9 }
 0x1ba   : > { %v826_v11 = vsel %vm698_vm15, %v633_v60, %v1428_v10 }
 0x1bb   : > { %923 = vmatmul.f32.gmra.mxu2 %v826_v11 }
 0x1bc   : > { %v638_v12 = vpop.f32.mrf.mxu1 }
 0x1bd   : > { %v639_v13 = vadd.f32 %v1958_v56, %v638_v12 }
 0x1bf   : > { %v1604_v14 = vpop.eup %1603  ;;  %v749_v15 = vmul.f32 1.442695, %v639_v13  ;;  %vm700_vm1 = vcmp.gt.f32.partialorder %v639_v13, 0.0 }
 0x1c0   : > { %v1429_v16 = vadd.f32 -1.0, %v1604_v14 }
 0x1c1   : > { %1605 = vpow2.f32 %v749_v15 }
 0x1c2   : > { %v827_v17 = vsel %vm699_vm0, %v636_v7, %v1429_v16 }
 0x1c3   : > { %926 = vmatmul.f32.gmra.mxu2 %v827_v17 }
 0x1c4   : > { %v641_v19 = vpop.f32.mrf.mxu1 }
 0x1c5   : > { %v642_v20 = vadd.f32 %v1958_v56, %v641_v19 }
 0x1c6   : > { %v879_v21 = vpop.f32.mrf.mxu2 }
 0x1c7   : > { %v1606_v22 = vpop.eup %1605  ;;  %v751_v23 = vmul.f32 1.442695, %v642_v20  ;;  %v880_v24 = vadd.f32 %v2043_v18, %v879_v21  ;;  %vm701_vm2 = vcmp.gt.f32.partialorder %v642_v20, 0.0 }
 0x1c8   : > { %v1430_v25 = vadd.f32 -1.0, %v1606_v22 }
 0x1c9   : > { %1607 = vpow2.f32 %v751_v23  ;;  %v1007_v26 = vmul.f32 1.442695, %v880_v24  ;;  %vm975_vm3 = vcmp.gt.f32.partialorder %v880_v24, 0.0 }
 0x1ca   : > { %v828_v27 = vsel %vm700_vm1, %v639_v13, %v1430_v25 }
 0x1cb   : > { %929 = vmatmul.f32.gmra.mxu2 %v828_v27  ;;  %1609 = vpow2.f32 %v1007_v26 }
 0x1cc   : > { %v644_v28 = vpop.f32.mrf.mxu1 }
 0x1cd   : > { %v645_v29 = vadd.f32 %v1958_v56, %v644_v28 }
 0x1ce   : > { %v882_v30 = vpop.f32.mrf.mxu2 }
 0x1cf   : > { %v1608_v31 = vpop.eup %1607  ;;  %v753_v32 = vmul.f32 1.442695, %v645_v29  ;;  %v883_v33 = vadd.f32 %v2043_v18, %v882_v30  ;;  %vm702_vm4 = vcmp.gt.f32.partialorder %v645_v29, 0.0 }
 0x1d0   : > { %v1431_v34 = vadd.f32 -1.0, %v1608_v31 }
 0x1d1   : > { %v1610_v35 = vpop.eup %1609  ;;  %1611 = vpow2.f32 %v753_v32  ;;  %v1009_v36 = vmul.f32 1.442695, %v883_v33  ;;  %vm976_vm5 = vcmp.gt.f32.partialorder %v883_v33, 0.0 }
 0x1d2   : > { %v829_v37 = vsel %vm701_vm2, %v642_v20, %v1431_v34  ;;  %v1461_v38 = vadd.f32 -1.0, %v1610_v35 }
 0x1d3   : > { %932 = vmatmul.f32.gmra.mxu2 %v829_v37  ;;  %1613 = vpow2.f32 %v1009_v36 }
 0x1d4   : > { %v647_v39 = vpop.f32.mrf.mxu1  ;;  %v1103_v40 = vsel %vm975_vm3, %v880_v24, %v1461_v38 }
 0x1d5   : > { %v648_v41 = vadd.f32 %v1958_v56, %v647_v39  ;;  %1171 = vmatmul.f32.vlgmr.msra.gmra.mxu3 %v1103_v40 }
 0x1d6   : > { %v885_v42 = vpop.f32.mrf.mxu2 }
 0x1d7   : > { %v1612_v43 = vpop.eup %1611  ;;  %v755_v44 = vmul.f32 1.442695, %v648_v41  ;;  %v886_v45 = vadd.f32 %v2043_v18, %v885_v42  ;;  %vm703_vm6 = vcmp.gt.f32.partialorder %v648_v41, 0.0 }
 0x1d8   : > { %v1432_v48 = vadd.f32 -1.0, %v1612_v43 }
 0x1d9   : > { %v1614_v46 = vpop.eup %1613  ;;  %1615 = vpow2.f32 %v755_v44  ;;  %v1011_v47 = vmul.f32 1.442695, %v886_v45  ;;  %vm977_vm7 = vcmp.gt.f32.partialorder %v886_v45, 0.0 }
 0x1da   : > { %v830_v49 = vsel %vm702_vm4, %v645_v29, %v1432_v48  ;;  %v1462_v50 = vadd.f32 -1.0, %v1614_v46 }
 0x1db   : > { %935 = vmatmul.f32.gmra.mxu2 %v830_v49  ;;  %1617 = vpow2.f32 %v1011_v47 }
 0x1dc   : > { %v650_v51 = vpop.f32.mrf.mxu1  ;;  %v1104_v52 = vsel %vm976_vm5, %v883_v33, %v1462_v50 }
 0x1dd   : > { %v651_v53 = vadd.f32 %v1958_v56, %v650_v51  ;;  %1174 = vmatmul.f32.gmra.mxu3 %v1104_v52 }
 0x1de   : > { %v888_v54 = vpop.f32.mrf.mxu2 }
 0x1df   : > { %v1616_v55 = vpop.eup %1615  ;;  %v757_v57 = vmul.f32 1.442695, %v651_v53  ;;  %v889_v58 = vadd.f32 %v2043_v18, %v888_v54  ;;  %vm704_vm8 = vcmp.gt.f32.partialorder %v651_v53, 0.0 }
 0x1e0   : > { %v1433_v59 = vadd.f32 -1.0, %v1616_v55 }
 0x1e1   : > { %v1618_v60 = vpop.eup %1617  ;;  %1619 = vpow2.f32 %v757_v57  ;;  %v1013_v61 = vmul.f32 1.442695, %v889_v58  ;;  %vm978_vm9 = vcmp.gt.f32.partialorder %v889_v58, 0.0 }
 0x1e2   : > { %v831_v62 = vsel %vm703_vm6, %v648_v41, %v1433_v59  ;;  %v1463_v63 = vadd.f32 -1.0, %v1618_v60 }
 0x1e3   : > { %938 = vmatmul.f32.gmra.mxu2 %v831_v62  ;;  %1621 = vpow2.f32 %v1013_v61 }
 0x1e4   : > { %v653_v0 = vpop.f32.mrf.mxu1  ;;  %v1105_v1 = vsel %vm977_vm7, %v886_v45, %v1463_v63 }
 0x1e5   : > { %v654_v2 = vadd.f32 %v1958_v56, %v653_v0  ;;  %1177 = vmatmul.f32.gmra.mxu3 %v1105_v1 }
 0x1e6   : > { %v891_v3 = vpop.f32.mrf.mxu2 }
 0x1e7   : > { %v1620_v4 = vpop.eup %1619  ;;  %v759_v5 = vmul.f32 1.442695, %v654_v2  ;;  %v892_v6 = vadd.f32 %v2043_v18, %v891_v3  ;;  %vm705_vm10 = vcmp.gt.f32.partialorder %v654_v2, 0.0 }
 0x1e8   : > { %v1434_v7 = vadd.f32 -1.0, %v1620_v4 }
 0x1e9   : > { %v1622_v8 = vpop.eup %1621  ;;  %1623 = vpow2.f32 %v759_v5  ;;  %v1015_v9 = vmul.f32 1.442695, %v892_v6  ;;  %vm979_vm11 = vcmp.gt.f32.partialorder %v892_v6, 0.0 }
 0x1ea   : > { %v832_v10 = vsel %vm704_vm8, %v651_v53, %v1434_v7  ;;  %v1464_v11 = vadd.f32 -1.0, %v1622_v8 }
 0x1eb   : > { %941 = vmatmul.f32.gmra.mxu2 %v832_v10  ;;  %1625 = vpow2.f32 %v1015_v9 }
 0x1ec   : > { %v656_v12 = vpop.f32.mrf.mxu1  ;;  %v1106_v13 = vsel %vm978_vm9, %v889_v58, %v1464_v11 }
 0x1ed   : > { %v657_v14 = vadd.f32 %v1958_v56, %v656_v12  ;;  %1180 = vmatmul.f32.gmra.mxu3 %v1106_v13 }
 0x1ee   : > { %v894_v15 = vpop.f32.mrf.mxu2 }
 0x1ef   : > { %v1624_v16 = vpop.eup %1623  ;;  %v761_v17 = vmul.f32 1.442695, %v657_v14  ;;  %v895_v19 = vadd.f32 %v2043_v18, %v894_v15  ;;  %vm706_vm12 = vcmp.gt.f32.partialorder %v657_v14, 0.0 }
 0x1f0   : > { %v1435_v20 = vadd.f32 -1.0, %v1624_v16 }
 0x1f1   : > { %v1626_v21 = vpop.eup %1625  ;;  %1627 = vpow2.f32 %v761_v17  ;;  %v1017_v22 = vmul.f32 1.442695, %v895_v19  ;;  %vm980_vm13 = vcmp.gt.f32.partialorder %v895_v19, 0.0 }
 0x1f2   : > { %v833_v23 = vsel %vm705_vm10, %v654_v2, %v1435_v20  ;;  %v1465_v24 = vadd.f32 -1.0, %v1626_v21 }
 0x1f3   : > { %944 = vmatmul.f32.gmra.mxu2 %v833_v23  ;;  %1629 = vpow2.f32 %v1017_v22 }
 0x1f4   : > { %v659_v25 = vpop.f32.mrf.mxu1  ;;  %v1107_v26 = vsel %vm979_vm11, %v892_v6, %v1465_v24 }
 0x1f5   : > { %v660_v27 = vadd.f32 %v1958_v56, %v659_v25  ;;  %1183 = vmatmul.f32.gmra.mxu3 %v1107_v26 }
 0x1f6   : > { %v897_v28 = vpop.f32.mrf.mxu2 }
 0x1f7   : > { %v1628_v29 = vpop.eup %1627  ;;  %v763_v30 = vmul.f32 1.442695, %v660_v27  ;;  %v898_v31 = vadd.f32 %v2043_v18, %v897_v28  ;;  %vm707_vm14 = vcmp.gt.f32.partialorder %v660_v27, 0.0 }
 0x1f8   : > { %v1436_v32 = vadd.f32 -1.0, %v1628_v29 }
 0x1f9   : > { %v1630_v33 = vpop.eup %1629  ;;  %1631 = vpow2.f32 %v763_v30  ;;  %v1019_v34 = vmul.f32 1.442695, %v898_v31  ;;  %vm981_vm15 = vcmp.gt.f32.partialorder %v898_v31, 0.0 }
 0x1fa   : > { %v834_v35 = vsel %vm706_vm12, %v657_v14, %v1436_v32  ;;  %v1466_v36 = vadd.f32 -1.0, %v1630_v33 }
 0x1fb   : > { %947 = vmatmul.f32.gmra.mxu2 %v834_v35  ;;  %1633 = vpow2.f32 %v1019_v34 }
 0x1fc   : > { %v662_v37 = vpop.f32.mrf.mxu1  ;;  %v1108_v38 = vsel %vm980_vm13, %v895_v19, %v1466_v36 }
 0x1fd   : > { %v663_v39 = vadd.f32 %v1958_v56, %v662_v37  ;;  %1186 = vmatmul.f32.gmra.mxu3 %v1108_v38 }
 0x1fe   : > { %v900_v40 = vpop.f32.mrf.mxu2 }
 0x1ff   : > { %v1632_v41 = vpop.eup %1631  ;;  %v765_v42 = vmul.f32 1.442695, %v663_v39  ;;  %v901_v43 = vadd.f32 %v2043_v18, %v900_v40  ;;  %vm708_vm0 = vcmp.gt.f32.partialorder %v663_v39, 0.0 }
 0x200   : > { %v1437_v44 = vadd.f32 -1.0, %v1632_v41 }
 0x201   : > { %v1634_v45 = vpop.eup %1633  ;;  %1635 = vpow2.f32 %v765_v42  ;;  %v1021_v48 = vmul.f32 1.442695, %v901_v43  ;;  %vm982_vm1 = vcmp.gt.f32.partialorder %v901_v43, 0.0 }
 0x202   : > { %v835_v46 = vsel %vm707_vm14, %v660_v27, %v1437_v44  ;;  %v1467_v47 = vadd.f32 -1.0, %v1634_v45 }
 0x203   : > { %950 = vmatmul.f32.gmra.mxu2 %v835_v46  ;;  %1637 = vpow2.f32 %v1021_v48 }
 0x204   : > { %v665_v49 = vpop.f32.mrf.mxu1  ;;  %v1109_v50 = vsel %vm981_vm15, %v898_v31, %v1467_v47 }
 0x205   : > { %v666_v51 = vadd.f32 %v1958_v56, %v665_v49  ;;  %1189 = vmatmul.f32.gmra.mxu3 %v1109_v50 }
 0x206   : > { %v903_v52 = vpop.f32.mrf.mxu2 }
 0x207   : > { %v1636_v53 = vpop.eup %1635  ;;  %v767_v54 = vmul.f32 1.442695, %v666_v51  ;;  %v904_v55 = vadd.f32 %v2043_v18, %v903_v52  ;;  %vm709_vm2 = vcmp.gt.f32.partialorder %v666_v51, 0.0 }
 0x208   : > { %v1438_v57 = vadd.f32 -1.0, %v1636_v53 }
 0x209   : > { %v1638_v58 = vpop.eup %1637  ;;  %1639 = vpow2.f32 %v767_v54  ;;  %v1023_v59 = vmul.f32 1.442695, %v904_v55  ;;  %vm983_vm3 = vcmp.gt.f32.partialorder %v904_v55, 0.0 }
 0x20a   : > { %v836_v60 = vsel %vm708_vm0, %v663_v39, %v1438_v57  ;;  %v1468_v61 = vadd.f32 -1.0, %v1638_v58 }
 0x20b   : > { %1641 = vpow2.f32 %v1023_v59  ;;  %953 = vmatmul.f32.gmra.mxu2 %v836_v60 }
 0x20c   : > { %v668_v62 = vpop.f32.mrf.mxu1  ;;  %v1110_v63 = vsel %vm982_vm1, %v901_v43, %v1468_v61 }
 0x20d   : > { %v669_v0 = vadd.f32 %v1958_v56, %v668_v62  ;;  %1192 = vmatmul.f32.gmra.mxu3 %v1110_v63 }
 0x20e   : > { %v906_v1 = vpop.f32.mrf.mxu2 }
 0x20f   : > { %v1640_v2 = vpop.eup %1639  ;;  %v769_v3 = vmul.f32 1.442695, %v669_v0  ;;  %v907_v4 = vadd.f32 %v2043_v18, %v906_v1  ;;  %vm710_vm4 = vcmp.gt.f32.partialorder %v669_v0, 0.0 }
 0x210   : > { %v1439_v5 = vadd.f32 -1.0, %v1640_v2 }
 0x211   : > { %v1642_v6 = vpop.eup %1641  ;;  %1643 = vpow2.f32 %v769_v3  ;;  %v1025_v7 = vmul.f32 1.442695, %v907_v4  ;;  %vm984_vm5 = vcmp.gt.f32.partialorder %v907_v4, 0.0 }
 0x212   : > { %v837_v8 = vsel %vm709_vm2, %v666_v51, %v1439_v5  ;;  %v1469_v9 = vadd.f32 -1.0, %v1642_v6 }
 0x213   : > { %1645 = vpow2.f32 %v1025_v7  ;;  %956 = vmatmul.f32.gmra.mxu2 %v837_v8 }
 0x214   : > { %v671_v10 = vpop.f32.mrf.mxu1  ;;  %v1111_v11 = vsel %vm983_vm3, %v904_v55, %v1469_v9 }
 0x215   : > { %v672_v12 = vadd.f32 %v1958_v56, %v671_v10  ;;  %1195 = vmatmul.f32.gmra.mxu3 %v1111_v11  ;;  %v1699_v56 = vld [vmem:[%s2172_s2 + $0x1] ss:$0 sm:$0xff] }
 0x216   : > { %v909_v13 = vpop.f32.mrf.mxu2 }
 0x217   : > { %v1644_v14 = vpop.eup %1643  ;;  %v771_v15 = vmul.f32 1.442695, %v672_v12  ;;  %v910_v16 = vadd.f32 %v2043_v18, %v909_v13  ;;  %vm711_vm6 = vcmp.gt.f32.partialorder %v672_v12, 0.0 }
 0x218   : > { %v1440_v17 = vadd.f32 -1.0, %v1644_v14 }
 0x219   : > { %v1646_v19 = vpop.eup %1645  ;;  %1647 = vpow2.f32 %v771_v15  ;;  %v1027_v20 = vmul.f32 1.442695, %v910_v16  ;;  %vm985_vm7 = vcmp.gt.f32.partialorder %v910_v16, 0.0 }
 0x21a   : > { %v838_v21 = vsel %vm710_vm4, %v669_v0, %v1440_v17  ;;  %v1470_v22 = vadd.f32 -1.0, %v1646_v19 }
 0x21b   : > { %1649 = vpow2.f32 %v1027_v20  ;;  %959 = vmatmul.f32.gmra.mxu2 %v838_v21 }
 0x21c   : > { %v674_v23 = vpop.f32.mrf.mxu1  ;;  %v1112_v24 = vsel %vm984_vm5, %v907_v4, %v1470_v22 }
 0x21d   : > { %v675_v25 = vadd.f32 %v1699_v56, %v674_v23  ;;  %1198 = vmatmul.f32.gmra.mxu3 %v1112_v24 }
 0x21e   : > { %v912_v26 = vpop.f32.mrf.mxu2 }
 0x21f   : > { %v1648_v27 = vpop.eup %1647  ;;  %v773_v28 = vmul.f32 1.442695, %v675_v25  ;;  %v913_v29 = vadd.f32 %v2043_v18, %v912_v26  ;;  %vm712_vm8 = vcmp.gt.f32.partialorder %v675_v25, 0.0 }
 0x220   : > { %v1441_v30 = vadd.f32 -1.0, %v1648_v27 }
 0x221   : > { %v1650_v31 = vpop.eup %1649  ;;  %1651 = vpow2.f32 %v773_v28  ;;  %v1029_v32 = vmul.f32 1.442695, %v913_v29  ;;  %vm986_vm9 = vcmp.gt.f32.partialorder %v913_v29, 0.0 }
 0x222   : > { %v839_v33 = vsel %vm711_vm6, %v672_v12, %v1441_v30  ;;  %v1471_v34 = vadd.f32 -1.0, %v1650_v31 }
 0x223   : > { %1653 = vpow2.f32 %v1029_v32  ;;  %962 = vmatmul.f32.gmra.mxu2 %v839_v33 }
 0x224   : > { %v677_v35 = vpop.f32.mrf.mxu1  ;;  %v1113_v36 = vsel %vm985_vm7, %v910_v16, %v1471_v34 }
 0x225   : > { %v678_v37 = vadd.f32 %v1699_v56, %v677_v35  ;;  %1201 = vmatmul.f32.gmra.mxu3 %v1113_v36 }
 0x226   : > { %v915_v38 = vpop.f32.mrf.mxu2 }
 0x227   : > { %v1652_v39 = vpop.eup %1651  ;;  %v775_v40 = vmul.f32 1.442695, %v678_v37  ;;  %v916_v41 = vadd.f32 %v2043_v18, %v915_v38  ;;  %vm713_vm10 = vcmp.gt.f32.partialorder %v678_v37, 0.0 }
 0x228   : > { %v1442_v42 = vadd.f32 -1.0, %v1652_v39 }
 0x229   : > { %v1654_v43 = vpop.eup %1653  ;;  %1655 = vpow2.f32 %v775_v40  ;;  %v1031_v44 = vmul.f32 1.442695, %v916_v41  ;;  %vm987_vm11 = vcmp.gt.f32.partialorder %v916_v41, 0.0 }
 0x22a   : > { %v840_v45 = vsel %vm712_vm8, %v675_v25, %v1442_v42  ;;  %v1472_v48 = vadd.f32 -1.0, %v1654_v43 }
 0x22b   : > { %1657 = vpow2.f32 %v1031_v44  ;;  %965 = vmatmul.f32.gmra.mxu2 %v840_v45 }
 0x22c   : > { %v680_v46 = vpop.f32.mrf.mxu1  ;;  %v1114_v47 = vsel %vm986_vm9, %v913_v29, %v1472_v48 }
 0x22d   : > { %v681_v49 = vadd.f32 %v1699_v56, %v680_v46  ;;  %1204 = vmatmul.f32.gmra.mxu3 %v1114_v47  ;;  %v2080_v56 = vld [vmem:[%s2174_s4] ss:$0 sm:$0xff] }
 0x22e   : > { %v918_v50 = vpop.f32.mrf.mxu2 }
 0x22f   : > { %v1656_v51 = vpop.eup %1655  ;;  %v777_v52 = vmul.f32 1.442695, %v681_v49  ;;  %v919_v53 = vadd.f32 %v2043_v18, %v918_v50  ;;  %vm714_vm12 = vcmp.gt.f32.partialorder %v681_v49, 0.0 }
 0x230   : > { %v1443_v54 = vadd.f32 -1.0, %v1656_v51 }
 0x231   : > { %v1658_v55 = vpop.eup %1657  ;;  %1659 = vpow2.f32 %v777_v52  ;;  %v1033_v57 = vmul.f32 1.442695, %v919_v53  ;;  %vm988_vm13 = vcmp.gt.f32.partialorder %v919_v53, 0.0 }
 0x232   : > { %v841_v58 = vsel %vm713_vm10, %v678_v37, %v1443_v54  ;;  %v1473_v59 = vadd.f32 -1.0, %v1658_v55 }
 0x233   : > { %1661 = vpow2.f32 %v1033_v57  ;;  %968 = vmatmul.f32.gmra.mxu2 %v841_v58 }
 0x234   : > { %v1115_v60 = vsel %vm987_vm11, %v916_v41, %v1473_v59 }
 0x235   : > { %1207 = vmatmul.f32.gmra.mxu3 %v1115_v60 }
 0x236   : > { %v921_v61 = vpop.f32.mrf.mxu2 }
 0x237   : > { %v1660_v62 = vpop.eup %1659  ;;  %v922_v63 = vadd.f32 %v2043_v18, %v921_v61 }
 0x238   : > { %v1444_v0 = vadd.f32 -1.0, %v1660_v62 }
 0x239   : > { %v1662_v1 = vpop.eup %1661  ;;  %v1035_v2 = vmul.f32 1.442695, %v922_v63  ;;  %vm989_vm14 = vcmp.gt.f32.partialorder %v922_v63, 0.0 }
 0x23a   : > { %v842_v3 = vsel %vm714_vm12, %v681_v49, %v1444_v0  ;;  %v1474_v4 = vadd.f32 -1.0, %v1662_v1 }
 0x23b   : > { %1663 = vpow2.f32 %v1035_v2  ;;  %971 = vmatmul.f32.gmra.mxu2 %v842_v3 }
 0x23c   : > { %v1116_v5 = vsel %vm988_vm13, %v919_v53, %v1474_v4 }
 0x23d   : > { %1210 = vmatmul.f32.gmra.mxu3 %v1116_v5 }
 0x23e   : > { %v924_v6 = vpop.f32.mrf.mxu2 }
 0x23f   : > { %v925_v7 = vadd.f32 %v2043_v18, %v924_v6 }
 0x241   : > { %v1664_v8 = vpop.eup %1663  ;;  %v1037_v9 = vmul.f32 1.442695, %v925_v7  ;;  %vm990_vm15 = vcmp.gt.f32.partialorder %v925_v7, 0.0 }
 0x242   : > { %v1475_v10 = vadd.f32 -1.0, %v1664_v8 }
 0x243   : > { %1665 = vpow2.f32 %v1037_v9 }
 0x244   : > { %v1117_v11 = vsel %vm989_vm14, %v922_v63, %v1475_v10 }
 0x245   : > { %1213 = vmatmul.f32.gmra.mxu3 %v1117_v11 }
 0x246   : > { %v927_v12 = vpop.f32.mrf.mxu2 }
 0x247   : > { %v928_v13 = vadd.f32 %v2043_v18, %v927_v12 }
 0x249   : > { %v1666_v14 = vpop.eup %1665  ;;  %v1039_v15 = vmul.f32 1.442695, %v928_v13  ;;  %vm991_vm0 = vcmp.gt.f32.partialorder %v928_v13, 0.0 }
 0x24a   : > { %v1476_v16 = vadd.f32 -1.0, %v1666_v14 }
 0x24b   : > { %1667 = vpow2.f32 %v1039_v15 }
 0x24c   : > { %v1118_v17 = vsel %vm990_vm15, %v925_v7, %v1476_v16 }
 0x24d   : > { %1216 = vmatmul.f32.gmra.mxu3 %v1118_v17 }
 0x24e   : > { %v930_v19 = vpop.f32.mrf.mxu2 }
 0x24f   : > { %v931_v20 = vadd.f32 %v2043_v18, %v930_v19 }
 0x251   : > { %v1668_v21 = vpop.eup %1667  ;;  %v1041_v22 = vmul.f32 1.442695, %v931_v20  ;;  %vm992_vm1 = vcmp.gt.f32.partialorder %v931_v20, 0.0 }
 0x252   : > { %v1477_v23 = vadd.f32 -1.0, %v1668_v21 }
 0x253   : > { %1669 = vpow2.f32 %v1041_v22 }
 0x254   : > { %v1119_v24 = vsel %vm991_vm0, %v928_v13, %v1477_v23 }
 0x255   : > { %1219 = vmatmul.f32.gmra.mxu3 %v1119_v24 }
 0x256   : > { %v933_v25 = vpop.f32.mrf.mxu2 }
 0x257   : > { %v934_v26 = vadd.f32 %v2043_v18, %v933_v25 }
 0x258   : > { %v1172_v27 = vpop.f32.mrf.mxu3 }
 0x259   : > { %v1670_v28 = vpop.eup %1669  ;;  %v1043_v29 = vmul.f32 1.442695, %v934_v26  ;;  %v1173_v30 = vadd.f32 %v2080_v56, %v1172_v27  ;;  %vm993_vm2 = vcmp.gt.f32.partialorder %v934_v26, 0.0 }
 0x25a   : > { %v1478_v31 = vadd.f32 -1.0, %v1670_v28 }
 0x25b   : > { %1671 = vpow2.f32 %v1043_v29  ;;  %1268 = vst [vmem:[%s2088_s9] sm:$0xff] %v1173_v30 }
 0x25c   : > { %v1120_v32 = vsel %vm992_vm1, %v931_v20, %v1478_v31 }
 0x25d   : > { %1222 = vmatmul.f32.gmra.mxu3 %v1120_v32 }
 0x25e   : > { %v936_v33 = vpop.f32.mrf.mxu2 }
 0x25f   : > { %v937_v34 = vadd.f32 %v2043_v18, %v936_v33 }
 0x260   : > { %v1175_v35 = vpop.f32.mrf.mxu3 }
 0x261   : > { %v1672_v36 = vpop.eup %1671  ;;  %v1045_v37 = vmul.f32 1.442695, %v937_v34  ;;  %v1176_v38 = vadd.f32 %v2080_v56, %v1175_v35  ;;  %vm994_vm3 = vcmp.gt.f32.partialorder %v937_v34, 0.0 }
 0x262   : > { %v1479_v39 = vadd.f32 -1.0, %v1672_v36 }
 0x263   : > { %1673 = vpow2.f32 %v1045_v37  ;;  %1269 = vst [vmem:[%s2088_s9 + $0x8] sm:$0xff] %v1176_v38 }
 0x264   : > { %v1121_v40 = vsel %vm993_vm2, %v934_v26, %v1479_v39 }
 0x265   : > { %1225 = vmatmul.f32.gmra.mxu3 %v1121_v40 }
 0x266   : > { %v939_v41 = vpop.f32.mrf.mxu2 }
 0x267   : > { %v940_v42 = vadd.f32 %v2043_v18, %v939_v41 }
 0x268   : > { %v1178_v43 = vpop.f32.mrf.mxu3 }
 0x269   : > { %v1674_v44 = vpop.eup %1673  ;;  %v1047_v45 = vmul.f32 1.442695, %v940_v42  ;;  %v1179_v48 = vadd.f32 %v2080_v56, %v1178_v43  ;;  %vm995_vm4 = vcmp.gt.f32.partialorder %v940_v42, 0.0 }
 0x26a   : > { %v1480_v46 = vadd.f32 -1.0, %v1674_v44 }
 0x26b   : > { %1675 = vpow2.f32 %v1047_v45  ;;  %1270 = vst [vmem:[%s2088_s9 + $0x10] sm:$0xff] %v1179_v48 }
 0x26c   : > { %v1122_v47 = vsel %vm994_vm3, %v937_v34, %v1480_v46 }
 0x26d   : > { %1228 = vmatmul.f32.gmra.mxu3 %v1122_v47 }
 0x26e   : > { %v942_v49 = vpop.f32.mrf.mxu2 }
 0x26f   : > { %v943_v50 = vadd.f32 %v2043_v18, %v942_v49 }
 0x270   : > { %v1181_v51 = vpop.f32.mrf.mxu3 }
 0x271   : > { %v1676_v52 = vpop.eup %1675  ;;  %v1049_v53 = vmul.f32 1.442695, %v943_v50  ;;  %v1182_v54 = vadd.f32 %v2080_v56, %v1181_v51  ;;  %vm996_vm5 = vcmp.gt.f32.partialorder %v943_v50, 0.0 }
 0x272   : > { %v1481_v55 = vadd.f32 -1.0, %v1676_v52 }
 0x273   : > { %1677 = vpow2.f32 %v1049_v53  ;;  %1271 = vst [vmem:[%s2088_s9 + $0x18] sm:$0xff] %v1182_v54 }
 0x274   : > { %v1123_v57 = vsel %vm995_vm4, %v940_v42, %v1481_v55 }
 0x275   : > { %1231 = vmatmul.f32.gmra.mxu3 %v1123_v57 }
 0x276   : > { %v945_v58 = vpop.f32.mrf.mxu2 }
 0x277   : > { %v946_v59 = vadd.f32 %v2043_v18, %v945_v58 }
 0x278   : > { %v1184_v60 = vpop.f32.mrf.mxu3 }
 0x279   : > { %v1678_v61 = vpop.eup %1677  ;;  %v1051_v62 = vmul.f32 1.442695, %v946_v59  ;;  %v1185_v63 = vadd.f32 %v2080_v56, %v1184_v60  ;;  %vm997_vm6 = vcmp.gt.f32.partialorder %v946_v59, 0.0 }
 0x27a   : > { %v1482_v0 = vadd.f32 -1.0, %v1678_v61 }
 0x27b   : > { %1679 = vpow2.f32 %v1051_v62  ;;  %1272 = vst [vmem:[%s2088_s9 + $0x20] sm:$0xff] %v1185_v63 }
 0x27c   : > { %v1124_v1 = vsel %vm996_vm5, %v943_v50, %v1482_v0 }
 0x27d   : > { %1234 = vmatmul.f32.gmra.mxu3 %v1124_v1 }
 0x27e   : > { %v948_v2 = vpop.f32.mrf.mxu2 }
 0x27f   : > { %v949_v3 = vadd.f32 %v2043_v18, %v948_v2 }
 0x280   : > { %v1187_v4 = vpop.f32.mrf.mxu3 }
 0x281   : > { %v1680_v5 = vpop.eup %1679  ;;  %v1053_v6 = vmul.f32 1.442695, %v949_v3  ;;  %v1188_v7 = vadd.f32 %v2080_v56, %v1187_v4  ;;  %vm998_vm7 = vcmp.gt.f32.partialorder %v949_v3, 0.0 }
 0x282   : > { %v1483_v8 = vadd.f32 -1.0, %v1680_v5 }
 0x283   : > { %1681 = vpow2.f32 %v1053_v6  ;;  %1273 = vst [vmem:[%s2088_s9 + $0x28] sm:$0xff] %v1188_v7 }
 0x284   : > { %v1125_v9 = vsel %vm997_vm6, %v946_v59, %v1483_v8 }
 0x285   : > { %1237 = vmatmul.f32.gmra.mxu3 %v1125_v9 }
 0x286   : > { %v951_v10 = vpop.f32.mrf.mxu2 }
 0x287   : > { %v952_v11 = vadd.f32 %v2043_v18, %v951_v10 }
 0x288   : > { %v1190_v12 = vpop.f32.mrf.mxu3 }
 0x289   : > { %v1682_v13 = vpop.eup %1681  ;;  %v1055_v14 = vmul.f32 1.442695, %v952_v11  ;;  %v1191_v15 = vadd.f32 %v2080_v56, %v1190_v12  ;;  %vm999_vm8 = vcmp.gt.f32.partialorder %v952_v11, 0.0 }
 0x28a   : > { %v1484_v16 = vadd.f32 -1.0, %v1682_v13 }
 0x28b   : > { %1683 = vpow2.f32 %v1055_v14  ;;  %1274 = vst [vmem:[%s2088_s9 + $0x30] sm:$0xff] %v1191_v15 }
 0x28c   : > { %v1126_v17 = vsel %vm998_vm7, %v949_v3, %v1484_v16 }
 0x28d   : > { %1240 = vmatmul.f32.gmra.mxu3 %v1126_v17 }
 0x28e   : > { %v954_v19 = vpop.f32.mrf.mxu2 }
 0x28f   : > { %v955_v20 = vadd.f32 %v2043_v18, %v954_v19 }
 0x290   : > { %v1193_v21 = vpop.f32.mrf.mxu3 }
 0x291   : > { %v1684_v22 = vpop.eup %1683  ;;  %v1057_v23 = vmul.f32 1.442695, %v955_v20  ;;  %v1194_v24 = vadd.f32 %v2080_v56, %v1193_v21  ;;  %vm1000_vm9 = vcmp.gt.f32.partialorder %v955_v20, 0.0 }
 0x292   : > { %v1485_v25 = vadd.f32 -1.0, %v1684_v22 }
 0x293   : > { %1685 = vpow2.f32 %v1057_v23  ;;  %1275 = vst [vmem:[%s2088_s9 + $0x38] sm:$0xff] %v1194_v24 }
 0x294   : > { %v1127_v26 = vsel %vm999_vm8, %v952_v11, %v1485_v25 }
 0x295   : > { %1243 = vmatmul.f32.gmra.mxu3 %v1127_v26 }
 0x296   : > { %v957_v27 = vpop.f32.mrf.mxu2 }
 0x297   : > { %v958_v28 = vadd.f32 %v2043_v18, %v957_v27 }
 0x298   : > { %v1196_v29 = vpop.f32.mrf.mxu3 }
 0x299   : > { %v1686_v30 = vpop.eup %1685  ;;  %v1059_v31 = vmul.f32 1.442695, %v958_v28  ;;  %v1197_v32 = vadd.f32 %v2080_v56, %v1196_v29  ;;  %vm1001_vm10 = vcmp.gt.f32.partialorder %v958_v28, 0.0 }
 0x29a   : > { %v1486_v33 = vadd.f32 -1.0, %v1686_v30 }
 0x29b   : > { %1687 = vpow2.f32 %v1059_v31  ;;  %1276 = vst [vmem:[%s2088_s9 + $0x40] sm:$0xff] %v1197_v32 }
 0x29c   : > { %v1128_v34 = vsel %vm1000_vm9, %v955_v20, %v1486_v33 }
 0x29d   : > { %1246 = vmatmul.f32.gmra.mxu3 %v1128_v34 }
 0x29e   : > { %v960_v35 = vpop.f32.mrf.mxu2 }
 0x29f   : > { %v961_v36 = vadd.f32 %v2043_v18, %v960_v35 }
 0x2a0   : > { %v1199_v37 = vpop.f32.mrf.mxu3 }
 0x2a1   : > { %v1688_v38 = vpop.eup %1687  ;;  %v1061_v39 = vmul.f32 1.442695, %v961_v36  ;;  %v1200_v40 = vadd.f32 %v2080_v56, %v1199_v37  ;;  %vm1002_vm11 = vcmp.gt.f32.partialorder %v961_v36, 0.0 }
 0x2a2   : > { %v1487_v41 = vadd.f32 -1.0, %v1688_v38 }
 0x2a3   : > { %1689 = vpow2.f32 %v1061_v39  ;;  %1277 = vst [vmem:[%s2088_s9 + $0x48] sm:$0xff] %v1200_v40 }
 0x2a4   : > { %v1129_v42 = vsel %vm1001_vm10, %v958_v28, %v1487_v41 }
 0x2a5   : > { %1249 = vmatmul.f32.gmra.mxu3 %v1129_v42 }
 0x2a6   : > { %v963_v43 = vpop.f32.mrf.mxu2 }
 0x2a7   : > { %v964_v44 = vadd.f32 %v2043_v18, %v963_v43 }
 0x2a8   : > { %v1202_v45 = vpop.f32.mrf.mxu3 }
 0x2a9   : > { %v1690_v48 = vpop.eup %1689  ;;  %v1063_v46 = vmul.f32 1.442695, %v964_v44  ;;  %v1203_v47 = vadd.f32 %v2080_v56, %v1202_v45  ;;  %vm1003_vm12 = vcmp.gt.f32.partialorder %v964_v44, 0.0 }
 0x2aa   : > { %v1488_v49 = vadd.f32 -1.0, %v1690_v48 }
 0x2ab   : > { %1691 = vpow2.f32 %v1063_v46  ;;  %1278 = vst [vmem:[%s2088_s9 + $0x50] sm:$0xff] %v1203_v47 }
 0x2ac   : > { %v1130_v50 = vsel %vm1002_vm11, %v961_v36, %v1488_v49 }
 0x2ad   : > { %1252 = vmatmul.f32.gmra.mxu3 %v1130_v50 }
 0x2ae   : > { %v966_v51 = vpop.f32.mrf.mxu2 }
 0x2af   : > { %v967_v52 = vadd.f32 %v2043_v18, %v966_v51 }
 0x2b0   : > { %v1205_v53 = vpop.f32.mrf.mxu3 }
 0x2b1   : > { %v1692_v54 = vpop.eup %1691  ;;  %v1065_v55 = vmul.f32 1.442695, %v967_v52  ;;  %v1206_v57 = vadd.f32 %v2080_v56, %v1205_v53  ;;  %vm1004_vm13 = vcmp.gt.f32.partialorder %v967_v52, 0.0 }
 0x2b2   : > { %v1489_v58 = vadd.f32 -1.0, %v1692_v54 }
 0x2b3   : > { %1693 = vpow2.f32 %v1065_v55  ;;  %1279 = vst [vmem:[%s2088_s9 + $0x58] sm:$0xff] %v1206_v57 }
 0x2b4   : > { %v1131_v59 = vsel %vm1003_vm12, %v964_v44, %v1489_v58 }
 0x2b5   : > { %1255 = vmatmul.f32.gmra.mxu3 %v1131_v59 }
 0x2b6   : > { %v969_v60 = vpop.f32.mrf.mxu2 }
 0x2b7   : > { %v970_v61 = vadd.f32 %v2043_v18, %v969_v60 }
 0x2b8   : > { %v1208_v62 = vpop.f32.mrf.mxu3 }
 0x2b9   : > { %v1694_v63 = vpop.eup %1693  ;;  %v1067_v0 = vmul.f32 1.442695, %v970_v61  ;;  %v1209_v1 = vadd.f32 %v2080_v56, %v1208_v62  ;;  %vm1005_vm14 = vcmp.gt.f32.partialorder %v970_v61, 0.0 }
 0x2ba   : > { %v1490_v2 = vadd.f32 -1.0, %v1694_v63 }
 0x2bb   : > { %1695 = vpow2.f32 %v1067_v0  ;;  %1280 = vst [vmem:[%s2088_s9 + $0x60] sm:$0xff] %v1209_v1 }
 0x2bc   : > { %v1132_v3 = vsel %vm1004_vm13, %v967_v52, %v1490_v2 }
 0x2bd   : > { %1258 = vmatmul.f32.gmra.mxu3 %v1132_v3 }
 0x2be   : > { %v972_v4 = vpop.f32.mrf.mxu2 }
 0x2bf   : > { %v973_v5 = vadd.f32 %v2043_v18, %v972_v4 }
 0x2c0   : > { %v1211_v6 = vpop.f32.mrf.mxu3 }
 0x2c1   : > { %v1696_v7 = vpop.eup %1695  ;;  %v1069_v8 = vmul.f32 1.442695, %v973_v5  ;;  %v1212_v9 = vadd.f32 %v2080_v56, %v1211_v6  ;;  %vm1006_vm15 = vcmp.gt.f32.partialorder %v973_v5, 0.0 }
 0x2c2   : > { %v1491_v10 = vadd.f32 -1.0, %v1696_v7 }
 0x2c3   : > { %1697 = vpow2.f32 %v1069_v8  ;;  %1281 = vst [vmem:[%s2088_s9 + $0x68] sm:$0xff] %v1212_v9 }
 0x2c4   : > { %v1133_v11 = vsel %vm1005_vm14, %v970_v61, %v1491_v10 }
 0x2c5   : > { %1261 = vmatmul.f32.gmra.mxu3 %v1133_v11 }
 0x2c8   : > { %v1214_v12 = vpop.f32.mrf.mxu3 }
 0x2c9   : > { %v1698_v13 = vpop.eup %1697  ;;  %v1215_v14 = vadd.f32 %v2080_v56, %v1214_v12 }
 0x2ca   : > { %v1492_v15 = vadd.f32 -1.0, %v1698_v13 }
 0x2cb   : > { %1282 = vst [vmem:[%s2088_s9 + $0x70] sm:$0xff] %v1215_v14 }
 0x2cc   : > { %v1134_v18 = vsel %vm1006_vm15, %v973_v5, %v1492_v15 }
 0x2cd   : > { %1264 = vmatmul.f32.gmra.mxu3 %v1134_v18 }
 0x2d0   : > { %v1217_v16 = vpop.f32.mrf.mxu3 }
 0x2d1   : > { %v1218_v17 = vadd.f32 %v2080_v56, %v1217_v16 }
 0x2d3   : > { %1283 = vst [vmem:[%s2088_s9 + $0x78] sm:$0xff] %v1218_v17 }
 0x2d8   : > { %v1220_v19 = vpop.f32.mrf.mxu3 }
 0x2d9   : > { %v1221_v20 = vadd.f32 %v2080_v56, %v1220_v19 }
 0x2db   : > { %1284 = vst [vmem:[%s2088_s9 + $0x80] sm:$0xff] %v1221_v20 }
 0x2e0   : > { %v1223_v21 = vpop.f32.mrf.mxu3 }
 0x2e1   : > { %v1224_v22 = vadd.f32 %v2080_v56, %v1223_v21 }
 0x2e3   : > { %1285 = vst [vmem:[%s2088_s9 + $0x88] sm:$0xff] %v1224_v22 }
 0x2e8   : > { %v1226_v23 = vpop.f32.mrf.mxu3 }
 0x2e9   : > { %v1227_v24 = vadd.f32 %v2080_v56, %v1226_v23 }
 0x2eb   : > { %1286 = vst [vmem:[%s2088_s9 + $0x90] sm:$0xff] %v1227_v24 }
 0x2f0   : > { %v1229_v25 = vpop.f32.mrf.mxu3 }
 0x2f1   : > { %v1230_v26 = vadd.f32 %v2080_v56, %v1229_v25 }
 0x2f3   : > { %1287 = vst [vmem:[%s2088_s9 + $0x98] sm:$0xff] %v1230_v26 }
 0x2f8   : > { %v1232_v27 = vpop.f32.mrf.mxu3 }
 0x2f9   : > { %v1233_v28 = vadd.f32 %v2080_v56, %v1232_v27 }
 0x2fb   : > { %1288 = vst [vmem:[%s2088_s9 + $0xa0] sm:$0xff] %v1233_v28 }
 0x300   : > { %v1235_v29 = vpop.f32.mrf.mxu3 }
 0x301   : > { %v1236_v30 = vadd.f32 %v2080_v56, %v1235_v29 }
 0x303   : > { %1289 = vst [vmem:[%s2088_s9 + $0xa8] sm:$0xff] %v1236_v30 }
 0x308   : > { %v1238_v31 = vpop.f32.mrf.mxu3 }
 0x309   : > { %v1239_v32 = vadd.f32 %v2080_v56, %v1238_v31 }
 0x30b   : > { %1290 = vst [vmem:[%s2088_s9 + $0xb0] sm:$0xff] %v1239_v32 }
 0x310   : > { %v1241_v33 = vpop.f32.mrf.mxu3 }
 0x311   : > { %v1242_v34 = vadd.f32 %v2080_v56, %v1241_v33 }
 0x313   : > { %1291 = vst [vmem:[%s2088_s9 + $0xb8] sm:$0xff] %v1242_v34 }
 0x318   : > { %v1244_v35 = vpop.f32.mrf.mxu3 }
 0x319   : > { %v1245_v36 = vadd.f32 %v2080_v56, %v1244_v35 }
 0x31b   : > { %1292 = vst [vmem:[%s2088_s9 + $0xc0] sm:$0xff] %v1245_v36 }
 0x320   : > { %v1247_v37 = vpop.f32.mrf.mxu3 }
 0x321   : > { %v1248_v38 = vadd.f32 %v2080_v56, %v1247_v37 }
 0x323   : > { %1293 = vst [vmem:[%s2088_s9 + $0xc8] sm:$0xff] %v1248_v38 }
 0x328   : > { %v1250_v39 = vpop.f32.mrf.mxu3 }
 0x329   : > { %v1251_v40 = vadd.f32 %v2080_v56, %v1250_v39 }
 0x32b   : > { %1294 = vst [vmem:[%s2088_s9 + $0xd0] sm:$0xff] %v1251_v40 }
 0x330   : > { %v1253_v41 = vpop.f32.mrf.mxu3 }
 0x331   : > { %v1254_v42 = vadd.f32 %v2080_v56, %v1253_v41 }
 0x333   : > { %1295 = vst [vmem:[%s2088_s9 + $0xd8] sm:$0xff] %v1254_v42 }
 0x338   : > { %v1256_v43 = vpop.f32.mrf.mxu3 }
 0x339   : > { %v1257_v44 = vadd.f32 %v2080_v56, %v1256_v43 }
 0x33b   : > { %1296 = vst [vmem:[%s2088_s9 + $0xe0] sm:$0xff] %v1257_v44 }
 0x340   : > { %v1259_v45 = vpop.f32.mrf.mxu3 }
 0x341   : > { %v1260_v48 = vadd.f32 %v2080_v56, %v1259_v45 }
 0x343   : > { %1297 = vst [vmem:[%s2088_s9 + $0xe8] sm:$0xff] %v1260_v48 }
 0x348   : > { %v1262_v46 = vpop.f32.mrf.mxu3 }
 0x349   : > { %v1263_v47 = vadd.f32 %v2080_v56, %v1262_v46 }
 0x34b   : > { %1298 = vst [vmem:[%s2088_s9 + $0xf0] sm:$0xff] %v1263_v47 }
 0x350   : > { %v1265_v49 = vpop.f32.mrf.mxu3 }
 0x351   : > { %v1266_v50 = vadd.f32 %v2080_v56, %v1265_v49 }
 0x353   : > { %1299 = vst [vmem:[%s2088_s9 + $0xf8] sm:$0xff] %v1266_v50 }
 0x354 PF: > { %s15_s18 = sadd.s32 1, %s1706_s18  }
 0x355   : > { %p12_p4 = scmp.ge.s32.totalorder %s15_s18, 4  }
 0x357   :  { %14 = sbr.rel (!%p12_p4) target bundleno = 1 (0x1), region = 72 }

</bundles_post_ra>
